<compile_context>
chip_gen: v7x
topology: tpu7x:2x2x1
jax: 0.10.0
libtpu: 0.0.40
codegen_flags: <defaults>
</compile_context>

<pallas_src>
import functools

import jax
import jax.numpy as jnp
from jax import lax
from jax.experimental import pallas as pl
from jax.experimental.pallas import tpu as pltpu


_MAX_S_CHUNK = 8192          # max lanes per grid step along the pooled axis
_ACC_LANES = 128             # lanes of the f32 partial-sum accumulator


def _vmem_capacity_bytes():
    """Trace-time VMEM capacity; conservative (v7x-sized) fallback if unavailable."""
    try:
        return int(pltpu.get_tpu_info().vmem_capacity_bytes)
    except Exception:
        return 64 << 20


def _c_subtile(c, n_block):
    """Channel sub-tile so the live accumulator stays <= ~32 vregs (n_block*c_sub <= 256)."""
    if c % 8 != 0 or n_block * c <= 256:
        return c
    return max(8, min(c, (256 // max(n_block, 1)) // 8 * 8))


def _choose_tiling(n, c, s, itemsize, target_block_bytes):
    """Pick (s_chunk, n_s, n_block) for pooling (n, c, s) -> (n, c).  No input padding."""
    # Largest S chunk within the per-row budget; multiple of 128 unless it covers all of S.
    per_row = max(1, c * itemsize)
    cap = (target_block_bytes // per_row) // 128 * 128
    cap = max(128, min(_MAX_S_CHUNK, cap))
    s_chunk = s if s <= cap else cap
    n_s = -(-s // s_chunk)

    row_bytes = c * s_chunk * itemsize
    limit_rows = max(1, target_block_bytes // row_bytes)
    limit_rows = min(limit_rows, 32)
    if c % 8 != 0:                       # cannot split channels -> bound rows directly
        limit_rows = min(limit_rows, max(1, 256 // c))
    if n >= 2:                           # keep >= 2 row blocks so v7x megacore gets both TCs
        limit_rows = min(limit_rows, n // 2)
    n_block = 1
    for d in range(1, n + 1):            # largest divisor of n within the budget
        if n % d == 0 and d <= limit_rows:
            n_block = d
    return s_chunk, n_s, n_block


# --------------------------------------------------------------------------------------
# Kernel 1: spatial mean pooling  (N, C, S) -> (N, C)   ==  AdaptiveAvgPool3d((1,1,1))
# --------------------------------------------------------------------------------------
def _pool_mean_kernel(x_ref, out_ref, acc_ref, *, s_total, s_chunk, n_s, c_sub, inv_s):
    """One (row-block, S-chunk) tile.

    x_ref:   (n_block, C, s_chunk)   native dtype (f32 / bf16 / ...), pipelined block
    out_ref: (1, n_block, C)         float32, written only at the last S step
    acc_ref: (n_block, C, 128)       float32 partial sums, persistent across S steps
    """
    si = pl.program_id(1)
    n_block, c, _ = x_ref.shape

    @pl.when(si == 0)
    def _init():
        acc_ref[...] = jnp.zeros_like(acc_ref)

    def accumulate(num_full, tail):
        lane0 = None
        if tail:
            lane0 = lax.broadcasted_iota(jnp.int32, (1, 1, _ACC_LANES), 2) == 0
        for c0 in range(0, c, c_sub):
            cs = min(c_sub, c - c0)
            acc = acc_ref[:, c0:c0 + cs, :]
            # Stream 128-lane slices straight from the pipelined VMEM block (per-slice ref
            # loads, cast to f32 right before the add) -> bounded vreg live set.
            for j in range(num_full):
                acc = acc + x_ref[:, c0:c0 + cs, j * 128:(j + 1) * 128].astype(jnp.float32)
            if tail:
                # Ragged tail (happens at most once per whole reduction): in-bounds narrow
                # slice, lane-reduce it and fold the scalar column into lane 0 of the acc.
                xs = x_ref[:, c0:c0 + cs,
                           num_full * 128:num_full * 128 + tail].astype(jnp.float32)
                tail_sum = jnp.sum(xs, axis=-1, keepdims=True)       # (n_block, cs, 1)
                acc = acc + jnp.where(lane0, tail_sum, 0.0)
            acc_ref[:, c0:c0 + cs, :] = acc

    full_per_chunk = s_chunk // 128
    rem_last = s_total - (n_s - 1) * s_chunk                         # in (0, s_chunk]
    last_full, last_tail = rem_last // 128, rem_last % 128
    ragged = (last_full != full_per_chunk) or (last_tail != 0)

    if not ragged:
        accumulate(full_per_chunk, 0)
    elif n_s == 1:
        accumulate(last_full, last_tail)
    else:
        @pl.when(si < n_s - 1)
        def _full_chunks():
            accumulate(full_per_chunk, 0)

        @pl.when(si == n_s - 1)
        def _last_chunk():
            accumulate(last_full, last_tail)

    @pl.when(si == n_s - 1)
    def _finalize():
        # One cross-lane reduce per row block / channel sub-tile, once, at the end.
        for c0 in range(0, c, c_sub):
            cs = min(c_sub, c - c0)
            out_ref[0, :, c0:c0 + cs] = (
                jnp.sum(acc_ref[:, c0:c0 + cs, :], axis=-1) * inv_s
            ).astype(out_ref.dtype)


def _spatial_mean(x, *, target_block_bytes, vmem_cap):
    """(N, C, S) any float dtype -> (N, C) float32 mean over the last axis."""
    n, c, s = x.shape
    itemsize = jnp.dtype(x.dtype).itemsize
    s_chunk, n_s, n_block = _choose_tiling(n, c, s, itemsize, target_block_bytes)
    n_i = n // n_block
    c_sub = _c_subtile(c, n_block)

    in_block_bytes = n_block * c * s_chunk * itemsize
    out_block_bytes = n_block * c * 4
    acc_bytes = n_block * c * _ACC_LANES * 4
    need = 2 * in_block_bytes + 2 * out_block_bytes + acc_bytes + (4 << 20)
    vmem_limit = int(min(int(vmem_cap * 0.72), max(16 << 20, need)))

    kernel = functools.partial(
        _pool_mean_kernel, s_total=s, s_chunk=s_chunk, n_s=n_s, c_sub=c_sub,
        inv_s=1.0 / float(s))
    out = pl.pallas_call(
        kernel,
        out_shape=jax.ShapeDtypeStruct((n_i, n_block, c), jnp.float32),
        grid_spec=pltpu.PrefetchScalarGridSpec(
            num_scalar_prefetch=0,
            grid=(n_i, n_s),                                   # reduction axis last
            in_specs=[pl.BlockSpec((n_block, c, s_chunk), lambda i, si: (i, 0, si))],
            out_specs=pl.BlockSpec((1, n_block, c), lambda i, si: (i, 0, 0)),
            scratch_shapes=[pltpu.VMEM((n_block, c, _ACC_LANES), jnp.float32)],
        ),
        compiler_params=pltpu.CompilerParams(
            dimension_semantics=("parallel", "arbitrary"),     # row blocks -> megacore
            vmem_limit_bytes=vmem_limit,
        ),
        cost_estimate=pl.CostEstimate(
            flops=int(n * c * s),
            transcendentals=0,
            bytes_accessed=int(n * c * s * itemsize + n * c * 4),
        ),
    )(x)
    return out.reshape(n, c)


# --------------------------------------------------------------------------------------
# Kernel 2: tiny epilogue — prototypes + squared-euclidean logits (all VMEM resident)
# --------------------------------------------------------------------------------------
def _head_kernel(s_ref, q_ref, out_ref, *, inv_temp, inv_shot):
    """s_ref: (shot, way, C) pooled support; q_ref: (Nq, C) pooled query."""
    sp = s_ref[...].astype(jnp.float32)
    q = q_ref[...].astype(jnp.float32)
    proto = jnp.sum(sp, axis=0) * inv_shot                           # (way, C)
    q2 = jnp.sum(q * q, axis=-1, keepdims=True)                      # (Nq, 1)
    p2 = jnp.sum(proto * proto, axis=-1)[None, :]                    # (1, way)
    qp = lax.dot_general(q, proto, (((1,), (1,)), ((), ())),         # contract C axes (MXU)
                         preferred_element_type=jnp.float32)         # (Nq, way)
    # -||q - p||^2 / T  ==  (2 q.p - ||q||^2 - ||p||^2) / T
    out_ref[...] = ((2.0 * qp - q2 - p2) * inv_temp).astype(out_ref.dtype)


# --------------------------------------------------------------------------------------
# Kernel 3: fused small-episode path — pool support + query + logits in one launch
# --------------------------------------------------------------------------------------
def _fused_protonet_kernel(s_ref, q_ref, out_ref, *, shot, way, inv_s, inv_temp):
    """s_ref: (shot*way, C, S), q_ref: (Nq, C, S), both whole in VMEM (small episodes)."""
    sp = jnp.sum(s_ref[...].astype(jnp.float32), axis=-1) * inv_s    # (shot*way, C)
    qp = jnp.sum(q_ref[...].astype(jnp.float32), axis=-1) * inv_s    # (Nq, C)
    proto = sp[0:way, :]
    for k in range(1, shot):
        proto = proto + sp[k * way:(k + 1) * way, :]
    proto = proto * (1.0 / float(shot))                              # (way, C)
    q2 = jnp.sum(qp * qp, axis=-1, keepdims=True)
    p2 = jnp.sum(proto * proto, axis=-1)[None, :]
    qdp = lax.dot_general(qp, proto, (((1,), (1,)), ((), ())),
                          preferred_element_type=jnp.float32)        # (Nq, way)
    out_ref[...] = ((2.0 * qdp - q2 - p2) * inv_temp).astype(out_ref.dtype)


# --------------------------------------------------------------------------------------
# Wrapper
# --------------------------------------------------------------------------------------
def protonet_forward(support, query, *, shot, way, temperature,
                     target_block_bytes=None, fuse_threshold_bytes=None):
    """support: (shot*way, C, D, H, W)  query: (Nq, C, D, H, W)  -> (Nq, way) float32."""
    ns, c, d, h, w = support.shape
    assert ns == shot * way, "support batch must be shot*way"
    assert query.shape[1:] == (c, d, h, w)
    nq = query.shape[0]
    s_sp = d * h * w

    vmem_cap = _vmem_capacity_bytes()
    if target_block_bytes is None:
        # ~8 MiB input blocks on 128 MiB VMEM parts (v5e/v6e), ~4 MiB on 64 MiB (v7x).
        target_block_bytes = max(1 << 20, min(8 << 20, vmem_cap // 16))
    if fuse_threshold_bytes is None:
        fuse_threshold_bytes = 2 << 20

    sup3 = support.reshape(ns, c, s_sp)
    qry3 = query.reshape(nq, c, s_sp)
    total_in_bytes = (sup3.size * jnp.dtype(sup3.dtype).itemsize
                      + qry3.size * jnp.dtype(qry3.dtype).itemsize)
    inv_temp = 1.0 / float(temperature)

    if total_in_bytes <= fuse_threshold_bytes:
        # Small episode (common ProtoNet feature-map case): launch-bound -> one fused call.
        kernel = functools.partial(_fused_protonet_kernel, shot=shot, way=way,
                                   inv_s=1.0 / float(s_sp), inv_temp=inv_temp)
        vmem_limit = int(min(int(vmem_cap * 0.72),
                             max(16 << 20, 6 * total_in_bytes + (2 << 20))))
        return pl.pallas_call(
            kernel,
            out_shape=jax.ShapeDtypeStruct((nq, way), jnp.float32),
            in_specs=[pl.BlockSpec(memory_space=pltpu.VMEM),
                      pl.BlockSpec(memory_space=pltpu.VMEM)],
            out_specs=pl.BlockSpec(memory_space=pltpu.VMEM),
            compiler_params=pltpu.CompilerParams(vmem_limit_bytes=vmem_limit),
        )(sup3, qry3)

    # Large episode: heavy, memory-bound spatial mean pooling, tiled & pipelined.
    s_pool = _spatial_mean(sup3, target_block_bytes=target_block_bytes,
                           vmem_cap=vmem_cap)                        # (shot*way, C) f32
    q_pool = _spatial_mean(qry3, target_block_bytes=target_block_bytes,
                           vmem_cap=vmem_cap)                        # (Nq, C) f32

    # Tiny epilogue (few KiB): keep everything resident in VMEM.
    kernel = functools.partial(_head_kernel, inv_temp=inv_temp,
                               inv_shot=1.0 / float(shot))
    return pl.pallas_call(
        kernel,
        out_shape=jax.ShapeDtypeStruct((nq, way), jnp.float32),
        in_specs=[pl.BlockSpec(memory_space=pltpu.VMEM),
                  pl.BlockSpec(memory_space=pltpu.VMEM)],
        out_specs=pl.BlockSpec(memory_space=pltpu.VMEM),
    )(s_pool.reshape(shot, way, c), q_pool)


# --------------------------------------------------------------------------------------
# Reference + self-test
# --------------------------------------------------------------------------------------
def _reference(support, query, *, shot, way, temperature):
    c = support.shape[1]
    s_pool = jnp.mean(support.astype(jnp.float32), axis=(2, 3, 4))
    proto = jnp.mean(s_pool.reshape(shot, way, c), axis=0)
    q_pool = jnp.mean(query.astype(jnp.float32), axis=(2, 3, 4))
    diff = q_pool[:, None, :] - proto[None, :, :]
    return -jnp.sum(diff * diff, axis=-1) / temperature


if __name__ == "__main__":
    key = jax.random.PRNGKey(0)
    k1, k2, k3, k4, k5, k6 = jax.random.split(key, 6)

    # Test 1: toy episode, f32, small S -> fused single-launch path.
    shot, way, temperature = 2, 5, 2.0
    C, D, H, W = 32, 2, 4, 4
    Nq = way * 3
    support = jax.random.normal(k1, (shot * way, C, D, H, W), dtype=jnp.float32)
    query = jax.random.normal(k2, (Nq, C, D, H, W), dtype=jnp.float32)
    logits = jax.block_until_ready(
        protonet_forward(support, query, shot=shot, way=way, temperature=temperature))
    ref = _reference(support, query, shot=shot, way=way, temperature=temperature)
    assert logits.shape == (Nq, way)
    assert jnp.allclose(logits, ref, atol=1e-4, rtol=1e-4), "mismatch (test 1, fused)"

    # Test 2: bf16, S = 4096, forced tiled path (two 2048-lane chunks, staged accumulation).
    shot2, way2, temp2 = 1, 5, 1.0
    C2, D2, H2, W2 = 16, 8, 16, 32
    Nq2 = 6
    support2 = jax.random.normal(k3, (shot2 * way2, C2, D2, H2, W2),
                                 dtype=jnp.float32).astype(jnp.bfloat16)
    query2 = jax.random.normal(k4, (Nq2, C2, D2, H2, W2),
                               dtype=jnp.float32).astype(jnp.bfloat16)
    logits2 = jax.block_until_ready(
        protonet_forward(support2, query2, shot=shot2, way=way2, temperature=temp2,
                         target_block_bytes=64 * 1024, fuse_threshold_bytes=0))
    ref2 = _reference(support2, query2, shot=shot2, way=way2, temperature=temp2)
    assert logits2.shape == (Nq2, way2)
    assert jnp.allclose(logits2, ref2, atol=1e-4, rtol=1e-3), "mismatch (test 2, tiled bf16)"

    # Test 3: ragged spatial extent (S = 3*7*13 = 273, not a multiple of 128), forced
    # multi-chunk tiled path -> exercises the masked last-chunk handling (no jnp.pad).
    shot3, way3, temp3 = 2, 3, 0.5
    C3, D3, H3, W3 = 24, 3, 7, 13
    Nq3 = 4
    support3 = jax.random.normal(k5, (shot3 * way3, C3, D3, H3, W3), dtype=jnp.float32)
    query3 = jax.random.normal(k6, (Nq3, C3, D3, H3, W3), dtype=jnp.float32)
    logits3 = jax.block_until_ready(
        protonet_forward(support3, query3, shot=shot3, way=way3, temperature=temp3,
                         target_block_bytes=16 * 1024, fuse_threshold_bytes=0))
    ref3 = _reference(support3, query3, shot=shot3, way=way3, temperature=temp3)
    assert logits3.shape == (Nq3, way3)
    assert jnp.allclose(logits3, ref3, atol=1e-4, rtol=1e-4), \
        "mismatch (test 3, ragged multi-chunk)"

    # Test 4: same ragged S, single-chunk tiled path (s_chunk == S, not lane aligned)
    # with >= 2 parallel row blocks.
    logits4 = jax.block_until_ready(
        protonet_forward(support3, query3, shot=shot3, way=way3, temperature=temp3,
                         fuse_threshold_bytes=0))
    assert jnp.allclose(logits4, ref3, atol=1e-4, rtol=1e-4), \
        "mismatch (test 4, ragged single-chunk)"

    print("KERNEL_OK")
</pallas_src>

<mosaic_0001>
module attributes {stable_mosaic.version = 11 : i64} {
  func.func @_fused_protonet_kernel(%arg0: memref<10x32x32xf32, #tpu.memory_space<vmem>>, %arg1: memref<15x32x32xf32, #tpu.memory_space<vmem>>, %arg2: memref<15x5xf32, #tpu.memory_space<vmem>>) attributes {dimension_semantics = [], scalar_prefetch = 0 : i64, scratch_operands = 0 : i64, tpu.core_type = #tpu.core_type<tc>} {
    %c0 = arith.constant 0 : index
    %c0_0 = arith.constant 0 : index
    %c0_1 = arith.constant 0 : index
    %0 = vector.load %arg0[%c0, %c0_0, %c0_1] : memref<10x32x32xf32, #tpu.memory_space<vmem>>, vector<10x32x32xf32>
    %cst = arith.constant dense<0.000000e+00> : vector<10x32xf32>
    %1 = vector.multi_reduction <add>, %0, %cst [2] : vector<10x32x32xf32> to vector<10x32xf32>
    %cst_2 = arith.constant 3.125000e-02 : f32
    %2 = vector.broadcast %cst_2 : f32 to vector<10x32xf32>
    %3 = arith.mulf %1, %2 : vector<10x32xf32>
    %c0_3 = arith.constant 0 : index
    %c0_4 = arith.constant 0 : index
    %c0_5 = arith.constant 0 : index
    %4 = vector.load %arg1[%c0_3, %c0_4, %c0_5] : memref<15x32x32xf32, #tpu.memory_space<vmem>>, vector<15x32x32xf32>
    %cst_6 = arith.constant dense<0.000000e+00> : vector<15x32xf32>
    %5 = vector.multi_reduction <add>, %4, %cst_6 [2] : vector<15x32x32xf32> to vector<15x32xf32>
    %cst_7 = arith.constant 3.125000e-02 : f32
    %6 = vector.broadcast %cst_7 : f32 to vector<15x32xf32>
    %7 = arith.mulf %5, %6 : vector<15x32xf32>
    %8 = vector.extract_strided_slice %3 {offsets = [0, 0], sizes = [5, 32], strides = [1, 1]} : vector<10x32xf32> to vector<5x32xf32>
    %9 = vector.extract_strided_slice %3 {offsets = [5, 0], sizes = [5, 32], strides = [1, 1]} : vector<10x32xf32> to vector<5x32xf32>
    %10 = arith.addf %8, %9 : vector<5x32xf32>
    %cst_8 = arith.constant 5.000000e-01 : f32
    %11 = vector.broadcast %cst_8 : f32 to vector<5x32xf32>
    %12 = arith.mulf %10, %11 : vector<5x32xf32>
    %13 = arith.mulf %7, %7 : vector<15x32xf32>
    %cst_9 = arith.constant dense<0.000000e+00> : vector<15xf32>
    %14 = vector.multi_reduction <add>, %13, %cst_9 [1] : vector<15x32xf32> to vector<15xf32>
    %15 = vector.shape_cast %14 : vector<15xf32> to vector<15x1xf32>
    %16 = arith.mulf %12, %12 : vector<5x32xf32>
    %cst_10 = arith.constant dense<0.000000e+00> : vector<5xf32>
    %17 = vector.multi_reduction <add>, %16, %cst_10 [1] : vector<5x32xf32> to vector<5xf32>
    %18 = vector.shape_cast %17 : vector<5xf32> to vector<1x5xf32>
    %cst_11 = arith.constant dense<0.000000e+00> : vector<15x5xf32>
    %19 = tpu.matmul %7, %12, %cst_11 {dimension_numbers = #tpu.dot_dimension_numbers<[1], [1], [0], [0], [0, 0, 1, 0], [], []>} : vector<15x32xf32>, vector<5x32xf32>, vector<15x5xf32> -> vector<15x5xf32>
    %cst_12 = arith.constant 2.000000e+00 : f32
    %20 = vector.broadcast %cst_12 : f32 to vector<15x5xf32>
    %21 = arith.mulf %20, %19 : vector<15x5xf32>
    %22 = vector.broadcast %15 : vector<15x1xf32> to vector<15x5xf32>
    %23 = arith.subf %21, %22 : vector<15x5xf32>
    %24 = vector.broadcast %18 : vector<1x5xf32> to vector<15x5xf32>
    %25 = arith.subf %23, %24 : vector<15x5xf32>
    %cst_13 = arith.constant 5.000000e-01 : f32
    %26 = vector.broadcast %cst_13 : f32 to vector<15x5xf32>
    %27 = arith.mulf %25, %26 : vector<15x5xf32>
    %c0_14 = arith.constant 0 : index
    %c0_15 = arith.constant 0 : index
    %28 = vector.load %arg2[%c0_14, %c0_15] : memref<15x5xf32, #tpu.memory_space<vmem>>, vector<15x5xf32>
    tpu.vector_store %arg2[%c0_14, %c0_15], %27 {strides = array<i32>} : memref<15x5xf32, #tpu.memory_space<vmem>>, vector<15x5xf32>,
    return
  }
}

</mosaic_0001>

<bundles_post_ra>
// kernel: tpu_custom_call.1
= control target key start
LH: loop header
LB: loop body
LE: loop exit
PB: predicated region body
PF: predicated region fallthrough
CT: control target
= control target key end

     0   :  { %7 = vsyncpa [#allocation3], 0  ;;  %s2397_s0 = inlined_call_operand.hbm [shape: f32[10,32,32], index: 0, kind: input, shape index: {}]   ;;  %s2398_s1 = inlined_call_operand.hbm [shape: f32[15,32,32], index: 1, kind: input, shape index: {}]   ;;  %s2399_s2 = inlined_call_operand.vmem [shape: f32[15,5], index: 2, kind: output, shape index: {}]  }
   0x1   :  { %8 = vsyncpa [#allocation5], 0  ;;  %s1818_s9 = smov [#allocation2]   ;;  %s1770_s13 = scalar_lea.hbm %s2397_s0, 5120 }
   0x2   :  { %s14_s10 = sshll.u32 %s1818_s9, 4  ;;  %p1771_p0 = scmp.ne.s32.totalorder %s2397_s0, %s1770_s13  ;;  %s15_s10 = int_to_ptr.vmem [resolvable:$true] %s14_s10 }
   0x3   :  { %p1774_p1 = scmp.lt.u32.totalorder %s1770_s13, %s2397_s0 }
   0x5   :  { %p1776_p2 = pnand %p1774_p1, %p1771_p0 }
   0x7   :  { %1779 = shalt.err (!%p1776_p2)
}
   0x8   :  { %s1780_s18 = scalar_lea.vmem %s15_s10, 5120  ;;  %p1785_p4 = scmp.lt.s32.totalorder %s15_s10, %s15_s10 }
   0x9   :  { %p1781_p3 = scmp.ne.s32.totalorder %s15_s10, %s1780_s18  ;;  %p1786_p5 = scmp.lt.s32.totalorder %s1780_s18, %s1780_s18 }
   0xb   :  { %p1787_p6 = por %p1786_p5, %p1785_p4 }
   0xd   :  { %p1788_p7 = pnand %p1787_p6, %p1781_p3 }
   0xf   :  { %1791 = shalt.err (!%p1788_p7)
}
  0x10   :  { %s1819_s19 = smov 128   ;;  %s1820_s20 = smov 8  }
  0x11   :  { %20 = dma.hbm_to_vmem [thread:$0]  %s2397_s0, 5120, %s15_s10, [#allocation3], %s1819_s19, %s1819_s19, %s1820_s20  }
  0x12   :  { %s1821_s23 = smov [#allocation4]   ;;  %s1792_s27 = scalar_lea.hbm %s2398_s1, 7680 }
  0x13   :  { %s26_s24 = sshll.u32 %s1821_s23, 4  ;;  %p1793_p8 = scmp.ne.s32.totalorder %s2398_s1, %s1792_s27  ;;  %s27_s24 = int_to_ptr.vmem [resolvable:$true] %s26_s24 }
  0x14   :  { %p1796_p9 = scmp.lt.u32.totalorder %s1792_s27, %s2398_s1 }
  0x16   :  { %p1798_p10 = pnand %p1796_p9, %p1793_p8 }
  0x18   :  { %1801 = shalt.err (!%p1798_p10)
}
  0x19   :  { %s1802_s4 = scalar_lea.vmem %s27_s24, 7680  ;;  %p1807_p12 = scmp.lt.s32.totalorder %s27_s24, %s27_s24 }
  0x1a   :  { %p1803_p11 = scmp.ne.s32.totalorder %s27_s24, %s1802_s4  ;;  %p1808_p13 = scmp.lt.s32.totalorder %s1802_s4, %s1802_s4 }
  0x1c   :  { %p1809_p0 = por %p1808_p13, %p1807_p12 }
  0x1e   :  { %p1810_p1 = pnand %p1809_p0, %p1803_p11 }
  0x20   :  { %1813 = shalt.err (!%p1810_p1)
}
  0x21   :  { %32 = dma.hbm_to_vmem [thread:$0]  %s2398_s1, 7680, %s27_s24, [#allocation5], %s1819_s19, %s1819_s19, %s1820_s20  }
  0x22   :  { %1814 = dma.done.wait [#allocation3], 5120  }
  0x23   :  { %1815 = vsyncadd [#allocation3], 4294962176 }
  0x24   :  { %1816 = dma.done.wait [#allocation5], 7680  }
  0x25   :  { %1817 = vsyncadd [#allocation5], 4294959616  ;;  %vm79_vm0 = vcmask 261120   ;;  %v43_v0 = vld [vmem:[#allocation2 + $0x20] sm:$0xff]  ;;  %v44_v2 = vld [vmem:[#allocation2 + $0x28] sm:$0xff]  ;;  %vm711_vm1 = vcmask 130112  }
  0x26   :  { %v39_v1 = vld [vmem:[#allocation2] sm:$0xff]  ;;  %v92_v3 = vsel %vm79_vm0, %v43_v0, 0.0  ;;  %v40_v5 = vld [vmem:[#allocation2 + $0x8] sm:$0xff]  ;;  %v95_v6 = vsel %vm79_vm0, %v44_v2, 0.0  ;;  %v45_v16 = vld [vmem:[#allocation2 + $0x30] sm:$0xff]  ;;  %vm718_vm2 = vcmask 195712  }
  0x27   :  { %v80_v4 = vsel %vm79_vm0, %v39_v1, 0.0  ;;  %93 = vadd.xlane.f32.xlu1 %v92_v3  ;;  %v83_v7 = vsel %vm79_vm0, %v40_v5, 0.0  ;;  %v60_v8 = vld [vmem:[#allocation2 + $0xa8] sm:$0xff]  ;;  %v59_v9 = vld [vmem:[#allocation2 + $0xa0] sm:$0xff]  ;;  %v41_v17 = vld [vmem:[#allocation2 + $0x10] sm:$0xff]  ;;  %v98_v18 = vsel %vm79_vm0, %v45_v16, 0.0 }
  0x28   :  { %81 = vadd.xlane.f32.xlu0 %v80_v4  ;;  %v143_v10 = vsel %vm79_vm0, %v60_v8, 0.0  ;;  %v140_v11 = vsel %vm79_vm0, %v59_v9, 0.0  ;;  %v64_v12 = vld [vmem:[#allocation2 + $0xc8] sm:$0xff]  ;;  %v63_v13 = vld [vmem:[#allocation2 + $0xc0] sm:$0xff]  ;;  %v86_v19 = vsel %vm79_vm0, %v41_v17, 0.0  ;;  %v65_v24 = vld [vmem:[#allocation2 + $0xd0] sm:$0xff] }
  0x29   :  { %v155_v14 = vsel %vm79_vm0, %v64_v12, 0.0  ;;  %v152_v15 = vsel %vm79_vm0, %v63_v13, 0.0  ;;  %v48_v20 = vld [vmem:[#allocation2 + $0x48] sm:$0xff]  ;;  %v47_v21 = vld [vmem:[#allocation2 + $0x40] sm:$0xff]  ;;  %v61_v25 = vld [vmem:[#allocation2 + $0xb0] sm:$0xff]  ;;  %v158_v26 = vsel %vm79_vm0, %v65_v24, 0.0 }
  0x2a   :  { %v107_v22 = vsel %vm79_vm0, %v48_v20, 0.0  ;;  %v104_v23 = vsel %vm79_vm0, %v47_v21, 0.0  ;;  %v146_v27 = vsel %vm79_vm0, %v61_v25, 0.0  ;;  %v68_v28 = vld [vmem:[#allocation2 + $0xe8] sm:$0xff]  ;;  %v67_v29 = vld [vmem:[#allocation2 + $0xe0] sm:$0xff]  ;;  %v46_v32 = vld [vmem:[#allocation2 + $0x38] sm:$0xff] }
  0x2b   :  { %96 = vadd.xlane.f32.xlu1 %v95_v6  ;;  %v167_v30 = vsel %vm79_vm0, %v68_v28, 0.0  ;;  %v164_v31 = vsel %vm79_vm0, %v67_v29, 0.0  ;;  %v42_v33 = vld [vmem:[#allocation2 + $0x18] sm:$0xff]  ;;  %v101_v34 = vsel %vm79_vm0, %v46_v32, 0.0  ;;  %v51_v36 = vld [vmem:[#allocation2 + $0x60] sm:$0xff]  ;;  %v49_v37 = vld [vmem:[#allocation2 + $0x50] sm:$0xff] }
  0x2c   :  { %84 = vadd.xlane.f32.xlu0 %v83_v7  ;;  %v89_v35 = vsel %vm79_vm0, %v42_v33, 0.0  ;;  %v116_v38 = vsel %vm79_vm0, %v51_v36, 0.0  ;;  %v110_v39 = vsel %vm79_vm0, %v49_v37, 0.0  ;;  %v62_v40 = vld [vmem:[#allocation2 + $0xb8] sm:$0xff]  ;;  %v52_v41 = vld [vmem:[#allocation2 + $0x68] sm:$0xff]  ;;  %v69_v44 = vld [vmem:[#allocation2 + $0xf0] sm:$0xff] }
  0x2d   :  { %v149_v42 = vsel %vm79_vm0, %v62_v40, 0.0  ;;  %v119_v43 = vsel %vm79_vm0, %v52_v41, 0.0  ;;  %v66_v45 = vld [vmem:[#allocation2 + $0xd8] sm:$0xff]  ;;  %v170_v46 = vsel %vm79_vm0, %v69_v44, 0.0  ;;  %v72_v48 = vld [vmem:[#allocation2 + $0x108] sm:$0xff]  ;;  %v71_v49 = vld [vmem:[#allocation2 + $0x100] sm:$0xff] }
  0x2e   :  { %v161_v47 = vsel %vm79_vm0, %v66_v45, 0.0  ;;  %v179_v50 = vsel %vm79_vm0, %v72_v48, 0.0  ;;  %v176_v51 = vsel %vm79_vm0, %v71_v49, 0.0  ;;  %v53_v52 = vld [vmem:[#allocation2 + $0x70] sm:$0xff]  ;;  %v50_v53 = vld [vmem:[#allocation2 + $0x58] sm:$0xff]  ;;  %v56_v56 = vld [vmem:[#allocation2 + $0x88] sm:$0xff] }
  0x2f   :  { %144 = vadd.xlane.f32.xlu1 %v143_v10  ;;  %v122_v54 = vsel %vm79_vm0, %v53_v52, 0.0  ;;  %v113_v55 = vsel %vm79_vm0, %v50_v53, 0.0  ;;  %v55_v57 = vld [vmem:[#allocation2 + $0x80] sm:$0xff]  ;;  %v131_v58 = vsel %vm79_vm0, %v56_v56, 0.0  ;;  %v73_v60 = vld [vmem:[#allocation2 + $0x110] sm:$0xff]  ;;  %v70_v61 = vld [vmem:[#allocation2 + $0xf8] sm:$0xff] }
  0x30   :  { %141 = vadd.xlane.f32.xlu0 %v140_v11  ;;  %v128_v59 = vsel %vm79_vm0, %v55_v57, 0.0  ;;  %v182_v62 = vsel %vm79_vm0, %v73_v60, 0.0  ;;  %v173_v63 = vsel %vm79_vm0, %v70_v61, 0.0  ;;  %v76_v0 = vld [vmem:[#allocation2 + $0x128] sm:$0xff]  ;;  %v75_v1 = vld [vmem:[#allocation2 + $0x120] sm:$0xff]  ;;  %v57_v4 = vld [vmem:[#allocation2 + $0x90] sm:$0xff] }
  0x31   :  { %v191_v2 = vsel %vm79_vm0, %v76_v0, 0.0  ;;  %v188_v3 = vsel %vm79_vm0, %v75_v1, 0.0  ;;  %v54_v5 = vld [vmem:[#allocation2 + $0x78] sm:$0xff]  ;;  %v134_v6 = vsel %vm79_vm0, %v57_v4, 0.0  ;;  %v77_v8 = vld [vmem:[#allocation2 + $0x130] sm:$0xff]  ;;  %v241_v12 = vld [vmem:[#allocation4 + $0x8] sm:$0xff] }
  0x32   :  { %v125_v7 = vsel %vm79_vm0, %v54_v5, 0.0  ;;  %v74_v9 = vld [vmem:[#allocation2 + $0x118] sm:$0xff]  ;;  %v194_v10 = vsel %vm79_vm0, %v77_v8, 0.0  ;;  %v240_v13 = vld [vmem:[#allocation4] sm:$0xff]  ;;  %v245_v16 = vld [vmem:[#allocation4 + $0x28] sm:$0xff]  ;;  %vm725_vm3 = vcmask 261312  }
  0x33   :  { %156 = vadd.xlane.f32.xlu1 %v155_v14  ;;  %v185_v11 = vsel %vm79_vm0, %v74_v9, 0.0  ;;  %v303_v14 = vsel %vm79_vm0, %v241_v12, 0.0  ;;  %v244_v17 = vld [vmem:[#allocation4 + $0x20] sm:$0xff]  ;;  %v78_v20 = vld [vmem:[#allocation2 + $0x138] sm:$0xff]  ;;  %v246_v24 = vld [vmem:[#allocation4 + $0x30] sm:$0xff]  ;;  %vm993_vm4 = vcmask 1041409  }
  0x34   :  { %153 = vadd.xlane.f32.xlu0 %v152_v15  ;;  %v300_v15 = vsel %vm79_vm0, %v240_v13, 0.0  ;;  %v58_v21 = vld [vmem:[#allocation2 + $0x98] sm:$0xff]  ;;  %v242_v25 = vld [vmem:[#allocation4 + $0x10] sm:$0xff]  ;;  %v249_v28 = vld [vmem:[#allocation4 + $0x48] sm:$0xff]  ;;  %vm995_vm5 = vcmask 1042434   ;;  %vm997_vm6 = vcmask 1043459  }
  0x35   :  { %v248_v29 = vld [vmem:[#allocation4 + $0x40] sm:$0xff]  ;;  %v247_v32 = vld [vmem:[#allocation4 + $0x38] sm:$0xff]  ;;  %v250_v37 = vld [vmem:[#allocation4 + $0x50] sm:$0xff]  ;;  %vm999_vm7 = vcmask 1044484   ;;  %vm1001_vm8 = vcmask 1045509   ;;  %vm1003_vm9 = vcmask 1046534  }
  0x36   :  { %v243_v33 = vld [vmem:[#allocation4 + $0x18] sm:$0xff]  ;;  %v252_v36 = vld [vmem:[#allocation4 + $0x60] sm:$0xff]  ;;  %v253_v41 = vld [vmem:[#allocation4 + $0x68] sm:$0xff]  ;;  %vm1005_vm10 = vcmask 1047559   ;;  %vm1162_vm11 = vcmask 258048   ;;  %vm1018_vm12 = vcmask 260096  }
  0x37   :  { %99 = vadd.xlane.f32.xlu1 %v98_v18  ;;  %v315_v18 = vsel %vm79_vm0, %v245_v16, 0.0  ;;  %v272_v40 = vld [vmem:[#allocation4 + $0x100] sm:$0xff]  ;;  %v273_v45 = vld [vmem:[#allocation4 + $0x108] sm:$0xff]  ;;  %v251_v48 = vld [vmem:[#allocation4 + $0x58] sm:$0xff]  ;;  %vm1747_vm13 = vcmask 38912   ;;  %vm1745_vm14 = vcmask 39936  }
  0x38   :  { %87 = vadd.xlane.f32.xlu0 %v86_v19  ;;  %v312_v19 = vsel %vm79_vm0, %v244_v17, 0.0  ;;  %v276_v44 = vld [vmem:[#allocation4 + $0x120] sm:$0xff]  ;;  %v277_v49 = vld [vmem:[#allocation4 + $0x128] sm:$0xff]  ;;  %v254_v53 = vld [vmem:[#allocation4 + $0x70] sm:$0xff] }
  0x39   :  { %v256_v52 = vld [vmem:[#allocation4 + $0x80] sm:$0xff]  ;;  %v274_v56 = vld [vmem:[#allocation4 + $0x110] sm:$0xff]  ;;  %v257_v57 = vld [vmem:[#allocation4 + $0x88] sm:$0xff] }
  0x3a   :  { %v280_v60 = vld [vmem:[#allocation4 + $0x140] sm:$0xff]  ;;  %v278_v61 = vld [vmem:[#allocation4 + $0x130] sm:$0xff]  ;;  %v255_v0 = vld [vmem:[#allocation4 + $0x78] sm:$0xff] }
  0x3b   :  { %108 = vadd.xlane.f32.xlu1 %v107_v22  ;;  %v197_v22 = vsel %vm79_vm0, %v78_v20, 0.0  ;;  %v281_v1 = vld [vmem:[#allocation4 + $0x148] sm:$0xff]  ;;  %v260_v4 = vld [vmem:[#allocation4 + $0xa0] sm:$0xff]  ;;  %v258_v5 = vld [vmem:[#allocation4 + $0x90] sm:$0xff] }
  0x3c   :  { %105 = vadd.xlane.f32.xlu0 %v104_v23  ;;  %v137_v23 = vsel %vm79_vm0, %v58_v21, 0.0  ;;  %v275_v8 = vld [vmem:[#allocation4 + $0x118] sm:$0xff]  ;;  %v261_v9 = vld [vmem:[#allocation4 + $0xa8] sm:$0xff]  ;;  %v282_v12 = vld [vmem:[#allocation4 + $0x150] sm:$0xff] }
  0x3d   :  { %v279_v13 = vld [vmem:[#allocation4 + $0x138] sm:$0xff]  ;;  %v285_v16 = vld [vmem:[#allocation4 + $0x168] sm:$0xff]  ;;  %v284_v17 = vld [vmem:[#allocation4 + $0x160] sm:$0xff] }
  0x3e   :  { %v435_v21 = vsel %vm79_vm0, %v285_v16, 0.0 }
  0x3f   :  { %159 = vadd.xlane.f32.xlu1 %v158_v26  ;;  %v318_v26 = vsel %vm79_vm0, %v246_v24, 0.0  ;;  %v259_v24 = vld [vmem:[#allocation4 + $0x98] sm:$0xff] }
  0x40   :  { %147 = vadd.xlane.f32.xlu0 %v146_v27  ;;  %v306_v27 = vsel %vm79_vm0, %v242_v25, 0.0 }
  0x43   :  { %168 = vadd.xlane.f32.xlu1 %v167_v30  ;;  %v327_v30 = vsel %vm79_vm0, %v249_v28, 0.0 }
  0x44   :  { %165 = vadd.xlane.f32.xlu0 %v164_v31  ;;  %v324_v31 = vsel %vm79_vm0, %v248_v29, 0.0  ;;  %v357_v29 = vsel %vm79_vm0, %v259_v24, 0.0 }
  0x47   :  { %102 = vadd.xlane.f32.xlu1 %v101_v34  ;;  %v321_v34 = vsel %vm79_vm0, %v247_v32, 0.0 }
  0x48   :  { %90 = vadd.xlane.f32.xlu0 %v89_v35  ;;  %v309_v35 = vsel %vm79_vm0, %v243_v33, 0.0 }
  0x4b   :  { %117 = vadd.xlane.f32.xlu1 %v116_v38  ;;  %v336_v38 = vsel %vm79_vm0, %v252_v36, 0.0 }
  0x4c   :  { %111 = vadd.xlane.f32.xlu0 %v110_v39  ;;  %v330_v39 = vsel %vm79_vm0, %v250_v37, 0.0 }
  0x4f   :  { %150 = vadd.xlane.f32.xlu1 %v149_v42  ;;  %v396_v42 = vsel %vm79_vm0, %v272_v40, 0.0 }
  0x50   :  { %120 = vadd.xlane.f32.xlu0 %v119_v43  ;;  %v339_v43 = vsel %vm79_vm0, %v253_v41, 0.0 }
  0x53   :  { %171 = vadd.xlane.f32.xlu1 %v170_v46  ;;  %v408_v46 = vsel %vm79_vm0, %v276_v44, 0.0 }
  0x54   :  { %162 = vadd.xlane.f32.xlu0 %v161_v47  ;;  %v399_v47 = vsel %vm79_vm0, %v273_v45, 0.0 }
  0x57   :  { %180 = vadd.xlane.f32.xlu1 %v179_v50  ;;  %v333_v50 = vsel %vm79_vm0, %v251_v48, 0.0 }
  0x58   :  { %177 = vadd.xlane.f32.xlu0 %v176_v51  ;;  %v411_v51 = vsel %vm79_vm0, %v277_v49, 0.0 }
  0x5b   :  { %123 = vadd.xlane.f32.xlu1 %v122_v54  ;;  %v348_v54 = vsel %vm79_vm0, %v256_v52, 0.0 }
  0x5c   :  { %114 = vadd.xlane.f32.xlu0 %v113_v55  ;;  %v342_v55 = vsel %vm79_vm0, %v254_v53, 0.0 }
  0x5f   :  { %132 = vadd.xlane.f32.xlu1 %v131_v58  ;;  %v402_v58 = vsel %vm79_vm0, %v274_v56, 0.0  ;;  %v289_v56 = vld [vmem:[#allocation4 + $0x188] sm:$0xff] }
  0x60   :  { %129 = vadd.xlane.f32.xlu0 %v128_v59  ;;  %v351_v59 = vsel %vm79_vm0, %v257_v57, 0.0 }
  0x63   :  { %183 = vadd.xlane.f32.xlu1 %v182_v62  ;;  %v420_v62 = vsel %vm79_vm0, %v280_v60, 0.0 }
  0x64   :  { %174 = vadd.xlane.f32.xlu0 %v173_v63  ;;  %v414_v63 = vsel %vm79_vm0, %v278_v61, 0.0 }
  0x67   :  { %192 = vadd.xlane.f32.xlu1 %v191_v2  ;;  %v345_v2 = vsel %vm79_vm0, %v255_v0, 0.0 }
  0x68   :  { %189 = vadd.xlane.f32.xlu0 %v188_v3  ;;  %v423_v3 = vsel %vm79_vm0, %v281_v1, 0.0 }
  0x6b   :  { %135 = vadd.xlane.f32.xlu1 %v134_v6  ;;  %v360_v6 = vsel %vm79_vm0, %v260_v4, 0.0  ;;  %v447_v4 = vsel %vm79_vm0, %v289_v56, 0.0 }
  0x6c   :  { %126 = vadd.xlane.f32.xlu0 %v125_v7  ;;  %v354_v7 = vsel %vm79_vm0, %v258_v5, 0.0  ;;  %v266_v5 = vld [vmem:[#allocation4 + $0xd0] sm:$0xff] }
  0x6f   :  { %195 = vadd.xlane.f32.xlu1 %v194_v10  ;;  %v405_v10 = vsel %vm79_vm0, %v275_v8, 0.0 }
  0x70   :  { %186 = vadd.xlane.f32.xlu0 %v185_v11  ;;  %v363_v11 = vsel %vm79_vm0, %v261_v9, 0.0 }
  0x73   :  { %304 = vadd.xlane.f32.xlu1 %v303_v14  ;;  %v426_v14 = vsel %vm79_vm0, %v282_v12, 0.0  ;;  %v263_v12 = vld [vmem:[#allocation4 + $0xb8] sm:$0xff] }
  0x74   :  { %301 = vadd.xlane.f32.xlu0 %v300_v15  ;;  %v417_v15 = vsel %vm79_vm0, %v279_v13, 0.0 }
  0x77   :  { %316 = vadd.xlane.f32.xlu1 %v315_v18  ;;  %v700_v18 = vlaneseq }
  0x78   :  { %313 = vadd.xlane.f32.xlu0 %v312_v19 }
  0x79   :  { %v1935_v25 = vand.u32 127, %v700_v18  ;;  %v1939_v32 = vshrl.u32 %v700_v18, 7 }
  0x7b   :  { %198 = vadd.xlane.f32.xlu1 %v197_v22  ;;  %v432_v22 = vsel %vm79_vm0, %v284_v17, 0.0  ;;  %v706_v33 = vadd.s32 4294967288, %v1935_v25  ;;  %v1946_v44 = vsub.s32 %v1935_v25, %v1939_v32 }
  0x7c   :  { %138 = vadd.xlane.f32.xlu0 %v137_v23  ;;  %v262_v23 = vld [vmem:[#allocation4 + $0xb0] sm:$0xff] }
  0x7d   :  { %v366_v28 = vsel %vm79_vm0, %v262_v23, 0.0  ;;  %v1949_v45 = vsub.s32 %v706_v33, %v1939_v32  ;;  %v268_v23 = vld [vmem:[#allocation4 + $0xe0] sm:$0xff] }
  0x7f   :  { %319 = vadd.xlane.f32.xlu1 %v318_v26 }
  0x80   :  { %307 = vadd.xlane.f32.xlu0 %v306_v27 }
  0x83   :  { %328 = vadd.xlane.f32.xlu1 %v327_v30  ;;  %v265_v30 = vld [vmem:[#allocation4 + $0xc8] sm:$0xff] }
  0x84   :  { %325 = vadd.xlane.f32.xlu0 %v324_v31  ;;  %v264_v31 = vld [vmem:[#allocation4 + $0xc0] sm:$0xff]  ;;  %v375_v36 = vsel %vm79_vm0, %v265_v30, 0.0 }
  0x85   :  { %v372_v37 = vsel %vm79_vm0, %v264_v31, 0.0 }
  0x87   :  { %322 = vadd.xlane.f32.xlu1 %v321_v34 }
  0x88   :  { %310 = vadd.xlane.f32.xlu0 %v309_v35 }
  0x8b   :  { %337 = vadd.xlane.f32.xlu1 %v336_v38 }
  0x8c   :  { %331 = vadd.xlane.f32.xlu0 %v330_v39 }
  0x8f   :  { %397 = vadd.xlane.f32.xlu1 %v396_v42  ;;  %v286_v42 = vld [vmem:[#allocation4 + $0x170] sm:$0xff] }
  0x90   :  { %340 = vadd.xlane.f32.xlu0 %v339_v43  ;;  %v283_v43 = vld [vmem:[#allocation4 + $0x158] sm:$0xff] }
  0x93   :  { %409 = vadd.xlane.f32.xlu1 %v408_v46 }
  0x94   :  { %400 = vadd.xlane.f32.xlu0 %v399_v47 }
  0x97   :  { %334 = vadd.xlane.f32.xlu1 %v333_v50  ;;  %v438_v50 = vsel %vm79_vm0, %v286_v42, 0.0 }
  0x98   :  { %412 = vadd.xlane.f32.xlu0 %v411_v51  ;;  %v429_v51 = vsel %vm79_vm0, %v283_v43, 0.0 }
  0x9b   :  { %349 = vadd.xlane.f32.xlu1 %v348_v54 }
  0x9c   :  { %343 = vadd.xlane.f32.xlu0 %v342_v55 }
  0x9f   :  { %403 = vadd.xlane.f32.xlu1 %v402_v58 }
  0xa0   :  { %352 = vadd.xlane.f32.xlu0 %v351_v59  ;;  %v288_v59 = vld [vmem:[#allocation4 + $0x180] sm:$0xff] }
  0xa1   :  { %v444_v9 = vsel %vm79_vm0, %v288_v59, 0.0 }
  0xa3   :  { %421 = vadd.xlane.f32.xlu1 %v420_v62 }
  0xa4   :  { %415 = vadd.xlane.f32.xlu0 %v414_v63 }
  0xa7   :  { %346 = vadd.xlane.f32.xlu1 %v345_v2 }
  0xa8   :  { %424 = vadd.xlane.f32.xlu0 %v423_v3 }
  0xab   :  { %361 = vadd.xlane.f32.xlu1 %v360_v6 }
  0xac   :  { %355 = vadd.xlane.f32.xlu0 %v354_v7 }
  0xaf   :  { %406 = vadd.xlane.f32.xlu1 %v405_v10 }
  0xb0   :  { %364 = vadd.xlane.f32.xlu0 %v363_v11 }
  0xb3   :  { %427 = vadd.xlane.f32.xlu1 %v426_v14  ;;  %v378_v14 = vsel %vm79_vm0, %v266_v5, 0.0 }
  0xb4   :  { %418 = vadd.xlane.f32.xlu0 %v417_v15  ;;  %v94_v19 = vpop.xlane.xlu1 %93 }
  0xb5   :  { %v82_v20 = vpop.xlane.xlu0 %81  ;;  %v204_v57 = vmul.f32 0.03125, %v94_v19 }
  0xb6   :  { %v200_v38 = vmul.f32 0.03125, %v82_v20 }
  0xb7   :  { %436 = vadd.xlane.f32.xlu1 %v435_v21  ;;  %v369_v21 = vsel %vm79_vm0, %v263_v12, 0.0  ;;  %v267_v12 = vld [vmem:[#allocation4 + $0xd8] sm:$0xff] }
  0xb8   :  { %433 = vadd.xlane.f32.xlu0 %v432_v22  ;;  %v97_v26 = vpop.xlane.xlu1 %96  ;;  %v269_v22 = vld [vmem:[#allocation4 + $0xe8] sm:$0xff] }
  0xb9   :  { %v85_v27 = vpop.xlane.xlu0 %84  ;;  %v205_v58 = vmul.f32 0.03125, %v97_v26  ;;  %v387_v33 = vsel %vm79_vm0, %v269_v22, 0.0 }
  0xba   :  { %v201_v39 = vmul.f32 0.03125, %v85_v27 }
  0xbb   :  { %367 = vadd.xlane.f32.xlu1 %v366_v28  ;;  %v713_v28 = vadd.s32 4294967280, %v1935_v25 }
  0xbc   :  { %358 = vadd.xlane.f32.xlu0 %v357_v29  ;;  %v145_v34 = vpop.xlane.xlu1 %144 }
  0xbd   :  { %v142_v35 = vpop.xlane.xlu0 %141  ;;  %v221_v40 = vmul.f32 0.03125, %v145_v34  ;;  %v384_v34 = vsel %vm79_vm0, %v268_v23, 0.0 }
  0xbe   :  { %v220_v41 = vmul.f32 0.03125, %v142_v35 }
  0xbf   :  { %v541_v46 = vadd.f32 %v221_v40, %v201_v39  ;;  %376 = vadd.xlane.f32.xlu1 %v375_v36  ;;  %v290_v39 = vld [vmem:[#allocation4 + $0x190] sm:$0xff]  ;;  %v287_v40 = vld [vmem:[#allocation4 + $0x178] sm:$0xff] }
  0xc0   :  { %v540_v47 = vadd.f32 %v220_v41, %v200_v38  ;;  %373 = vadd.xlane.f32.xlu0 %v372_v37  ;;  %v157_v48 = vpop.xlane.xlu1 %156  ;;  %v1977_v41 = vsub.s32 %v713_v28, %v1939_v32 }
  0xc1   :  { %v154_v49 = vpop.xlane.xlu0 %153  ;;  %v561_v52 = vmul.f32 0.5, %v541_v46  ;;  %v225_v54 = vmul.f32 0.03125, %v157_v48  ;;  %v450_v48 = vsel %vm79_vm0, %v290_v39, 0.0 }
  0xc2   :  { %v560_v53 = vmul.f32 0.5, %v540_v47  ;;  %v224_v55 = vmul.f32 0.03125, %v154_v49  ;;  %v441_v49 = vsel %vm79_vm0, %v287_v40, 0.0 }
  0xc3   :  { %v1023_v60 = vmul.f32 %v561_v52, %v561_v52  ;;  %v1551_v61 = vrot.slane %v561_v52, %v1949_v45  ;;  %439 = vadd.xlane.f32.xlu1 %v438_v50  ;;  %v545_v0 = vadd.f32 %v225_v54, %v205_v58  ;;  %v293_v54 = vld [vmem:[#allocation4 + $0x1a8] sm:$0xff] }
  0xc4   :  { %v1022_v62 = vmul.f32 %v560_v53, %v560_v53  ;;  %v1547_v63 = vrot.slane %v560_v53, %v1946_v44  ;;  %v544_v1 = vadd.f32 %v224_v55, %v204_v57  ;;  %430 = vadd.xlane.f32.xlu0 %v429_v51  ;;  %v100_v2 = vpop.xlane.xlu1 %99  ;;  %v292_v55 = vld [vmem:[#allocation4 + $0x1a0] sm:$0xff] }
  0xc5   :  { %v88_v3 = vpop.xlane.xlu0 %87  ;;  %v1069_v6 = vrot.slane %v1023_v60, %v1949_v45  ;;  %v565_v10 = vmul.f32 0.5, %v545_v0  ;;  %v206_v35 = vmul.f32 0.03125, %v100_v2  ;;  %v459_v2 = vsel %vm79_vm0, %v293_v54, 0.0 }
  0xc6   :  { %v1065_v7 = vrot.slane %v1022_v62, %v1946_v44  ;;  %v1959_v8 = vsel %vm711_vm1, %v1551_v61, %v1547_v63  ;;  %v564_v11 = vmul.f32 0.5, %v544_v1  ;;  %v202_v36 = vmul.f32 0.03125, %v88_v3 }
  0xc7   :  { %448 = vadd.xlane.f32.xlu1 %v447_v4  ;;  %v1027_v15 = vmul.f32 %v565_v10, %v565_v10  ;;  %v1570_v16 = vrot.slane %v565_v10, %v1949_v45  ;;  %v456_v3 = vsel %vm79_vm0, %v292_v55, 0.0 }
  0xc8   :  { %v1963_v13 = vsel %vm711_vm1, %v1069_v6, %v1065_v7  ;;  %v1026_v17 = vmul.f32 %v564_v11, %v564_v11  ;;  %v1566_v18 = vrot.slane %v564_v11, %v1946_v44  ;;  %445 = vadd.xlane.f32.xlu0 %v444_v9  ;;  %v109_v19 = vpop.xlane.xlu1 %108  ;;  %v270_v9 = vld [vmem:[#allocation4 + $0xf0] sm:$0xff] }
  0xc9   :  { %v106_v20 = vpop.xlane.xlu0 %105  ;;  %v1088_v24 = vrot.slane %v1027_v15, %v1949_v45  ;;  %v209_v56 = vmul.f32 0.03125, %v109_v19  ;;  %v390_v19 = vsel %vm79_vm0, %v270_v9, 0.0 }
  0xca   :  { %v1084_v26 = vrot.slane %v1026_v17, %v1946_v44  ;;  %v1571_v27 = vsel %vm711_vm1, %v1570_v16, %v1566_v18  ;;  %v208_v57 = vmul.f32 0.03125, %v106_v20  ;;  %v381_v20 = vsel %vm79_vm0, %v267_v12, 0.0 }
  0xcb   :  { %379 = vadd.xlane.f32.xlu1 %v378_v14 }
  0xcc   :  { %v1089_v29 = vsel %vm711_vm1, %v1088_v24, %v1084_v26  ;;  %370 = vadd.xlane.f32.xlu0 %v369_v21  ;;  %v160_v30 = vpop.xlane.xlu1 %159  ;;  %v294_v21 = vld [vmem:[#allocation4 + $0x1b0] sm:$0xff] }
  0xcd   :  { %v148_v31 = vpop.xlane.xlu0 %147  ;;  %v226_v37 = vmul.f32 0.03125, %v160_v30  ;;  %v462_v28 = vsel %vm79_vm0, %v294_v21, 0.0 }
  0xce   :  { %v222_v38 = vmul.f32 0.03125, %v148_v31 }
  0xcf   :  { %v546_v42 = vadd.f32 %v226_v37, %v206_v35  ;;  %388 = vadd.xlane.f32.xlu1 %v387_v33  ;;  %v297_v33 = vld [vmem:[#allocation4 + $0x1c8] sm:$0xff]  ;;  %v720_v35 = vadd.s32 4294967272, %v1935_v25 }
  0xd0   :  { %v542_v43 = vadd.f32 %v222_v38, %v202_v36  ;;  %385 = vadd.xlane.f32.xlu0 %v384_v34  ;;  %v169_v46 = vpop.xlane.xlu1 %168  ;;  %v296_v34 = vld [vmem:[#allocation4 + $0x1c0] sm:$0xff]  ;;  %v471_v40 = vsel %vm79_vm0, %v297_v33, 0.0 }
  0xd1   :  { %v166_v47 = vpop.xlane.xlu0 %165  ;;  %v566_v50 = vmul.f32 0.5, %v546_v42  ;;  %v229_v52 = vmul.f32 0.03125, %v169_v46  ;;  %v468_v42 = vsel %vm79_vm0, %v296_v34, 0.0 }
  0xd2   :  { %v562_v51 = vmul.f32 0.5, %v542_v43  ;;  %v228_v53 = vmul.f32 0.03125, %v166_v47 }
  0xd3   :  { %v1028_v58 = vmul.f32 %v566_v50, %v566_v50  ;;  %v1575_v59 = vrot.slane %v566_v50, %v1977_v41  ;;  %451 = vadd.xlane.f32.xlu1 %v450_v48  ;;  %v549_v62 = vadd.f32 %v229_v52, %v209_v56  ;;  %v271_v50 = vld [vmem:[#allocation4 + $0xf8] sm:$0xff] }
  0xd4   :  { %v1024_v60 = vmul.f32 %v562_v51, %v562_v51  ;;  %v1556_v61 = vrot.slane %v562_v51, %v1977_v41  ;;  %v548_v63 = vadd.f32 %v228_v53, %v208_v57  ;;  %442 = vadd.xlane.f32.xlu0 %v441_v49  ;;  %v103_v0 = vpop.xlane.xlu1 %102  ;;  %v295_v49 = vld [vmem:[#allocation4 + $0x1b8] sm:$0xff]  ;;  %v2020_v51 = vsub.s32 %v720_v35, %v1939_v32 }
  0xd5   :  { %v91_v1 = vpop.xlane.xlu0 %90  ;;  %v1093_v4 = vrot.slane %v1028_v58, %v1977_v41  ;;  %v1987_v5 = vsel %vm718_vm2, %v1575_v59, %v1571_v27  ;;  %v1994_v10 = vmul.f32 0.5, %v549_v62  ;;  %v207_v37 = vmul.f32 0.03125, %v103_v0  ;;  %v299_v32 = vld [vmem:[#allocation4 + $0x1d8] sm:$0xff] }
  0xd6   :  { %v1074_v6 = vrot.slane %v1024_v60, %v1977_v41  ;;  %v1992_v7 = vsel %vm718_vm2, %v1556_v61, %v1959_v8  ;;  %v1996_v11 = vmul.f32 0.5, %v548_v63  ;;  %v465_v56 = vsel %vm79_vm0, %v295_v49, 0.0 }
  0xd7   :  { %v1999_v14 = vsel %vm718_vm2, %v1093_v4, %v1089_v29  ;;  %460 = vadd.xlane.f32.xlu1 %v459_v2  ;;  %v1031_v16 = vmul.f32 %v1994_v10, %v1994_v10  ;;  %v203_v29 = vmul.f32 0.03125, %v91_v1  ;;  %v393_v57 = vsel %vm79_vm0, %v271_v50, 0.0  ;;  %v298_v2 = vld [vmem:[#allocation4 + $0x1d0] sm:$0xff] }
  0xd8   :  { %v1075_v15 = vsel %vm718_vm2, %v1074_v6, %v1963_v13  ;;  %v1030_v8 = vmul.f32 %v1996_v11, %v1996_v11  ;;  %457 = vadd.xlane.f32.xlu0 %v456_v3  ;;  %v118_v17 = vpop.xlane.xlu1 %117  ;;  %v291_v13 = vld [vmem:[#allocation4 + $0x198] sm:$0xff] }
  0xd9   :  { %v112_v18 = vpop.xlane.xlu0 %111  ;;  %v1107_v22 = vrot.slane %v1031_v16, %v1949_v45  ;;  %v453_v31 = vsel %vm79_vm0, %v291_v13, 0.0  ;;  %v212_v62 = vmul.f32 0.03125, %v118_v17 }
  0xda   :  { %v1103_v23 = vrot.slane %v1030_v8, %v1946_v44  ;;  %v210_v43 = vmul.f32 0.03125, %v112_v18  ;;  %v477_v18 = vsel %vm79_vm0, %v299_v32, 0.0 }
  0xdb   :  { %391 = vadd.xlane.f32.xlu1 %v390_v19 }
  0xdc   :  { %v2012_v24 = vsel %vm711_vm1, %v1107_v22, %v1103_v23  ;;  %382 = vadd.xlane.f32.xlu0 %v381_v20  ;;  %v151_v26 = vpop.xlane.xlu1 %150 }
  0xdd   :  { %v121_v27 = vpop.xlane.xlu0 %120  ;;  %v223_v30 = vmul.f32 0.03125, %v151_v26 }
  0xde   :  { %v213_v0 = vmul.f32 0.03125, %v121_v27 }
  0xdf   :  { %v543_v36 = vadd.f32 %v223_v30, %v203_v29  ;;  %463 = vadd.xlane.f32.xlu1 %v462_v28 }
  0xe0   :  { %454 = vadd.xlane.f32.xlu0 %v453_v31  ;;  %v172_v38 = vpop.xlane.xlu1 %171 }
  0xe1   :  { %v163_v39 = vpop.xlane.xlu0 %162  ;;  %v563_v46 = vmul.f32 0.5, %v543_v36  ;;  %v230_v47 = vmul.f32 0.03125, %v172_v38 }
  0xe2   :  { %v227_v48 = vmul.f32 0.03125, %v163_v39 }
  0xe3   :  { %v1025_v25 = vmul.f32 %v563_v46, %v563_v46  ;;  %v550_v52 = vadd.f32 %v230_v47, %v210_v43  ;;  %472 = vadd.xlane.f32.xlu1 %v471_v40  ;;  %v1561_v63 = vrot.slane %v563_v46, %v2020_v51 }
  0xe4   :  { %v547_v53 = vadd.f32 %v227_v48, %v207_v37  ;;  %469 = vadd.xlane.f32.xlu0 %v468_v42  ;;  %v181_v54 = vpop.xlane.xlu1 %180 }
  0xe5   :  { %v178_v55 = vpop.xlane.xlu0 %177  ;;  %v1079_v58 = vrot.slane %v1025_v25, %v2020_v51  ;;  %v2025_v59 = vmul.f32 0.5, %v550_v52  ;;  %v233_v61 = vmul.f32 0.03125, %v181_v54  ;;  %v1562_v23 = vsel %vm725_vm3, %v1561_v63, %v1992_v7 }
  0xe6   :  { %v567_v60 = vmul.f32 0.5, %v547_v53  ;;  %v232_v1 = vmul.f32 0.03125, %v178_v55  ;;  %v1589_v63 = vrot.slane %v1994_v10, %v1949_v45 }
  0xe7   :  { %v1080_v3 = vsel %vm725_vm3, %v1079_v58, %v1075_v15  ;;  %v1032_v4 = vmul.f32 %v2025_v59, %v2025_v59  ;;  %466 = vadd.xlane.f32.xlu1 %v465_v56  ;;  %v553_v12 = vadd.f32 %v233_v61, %v213_v0  ;;  %v474_v15 = vsel %vm79_vm0, %v298_v2, 0.0 }
  0xe8   :  { %v1029_v6 = vmul.f32 %v567_v60, %v567_v60  ;;  %v1580_v9 = vrot.slane %v567_v60, %v2020_v51  ;;  %v552_v16 = vadd.f32 %v232_v1, %v212_v62  ;;  %394 = vadd.xlane.f32.xlu0 %v393_v57  ;;  %v124_v8 = vpop.xlane.xlu1 %123  ;;  %v1585_v2 = vrot.slane %v1996_v11, %v1946_v44 }
  0xe9   :  { %v115_v17 = vpop.xlane.xlu0 %114  ;;  %v1112_v19 = vrot.slane %v1032_v4, %v1977_v41  ;;  %v2036_v21 = vmul.f32 0.5, %v553_v12  ;;  %v214_v36 = vmul.f32 0.03125, %v124_v8 }
  0xea   :  { %v1098_v20 = vrot.slane %v1029_v6, %v2020_v51  ;;  %v2038_v22 = vmul.f32 0.5, %v552_v16  ;;  %v1581_v13 = vsel %vm725_vm3, %v1580_v9, %v1987_v5  ;;  %v211_v37 = vmul.f32 0.03125, %v115_v17 }
  0xeb   :  { %v1113_v26 = vsel %vm718_vm2, %v1112_v19, %v2012_v24  ;;  %478 = vadd.xlane.f32.xlu1 %v477_v18  ;;  %v2049_v28 = vsel %vm993_vm4, %v1581_v13, %v1562_v23  ;;  %v1035_v29 = vmul.f32 %v2036_v21, %v2036_v21  ;;  %v1594_v18 = vrot.slane %v2025_v59, %v1977_v41 }
  0xec   :  { %v1099_v27 = vsel %vm725_vm3, %v1098_v20, %v1999_v14  ;;  %v1034_v30 = vmul.f32 %v2038_v22, %v2038_v22  ;;  %475 = vadd.xlane.f32.xlu0 %v474_v15  ;;  %v133_v7 = vpop.xlane.xlu1 %132  ;;  %v1590_v23 = vsel %vm711_vm1, %v1589_v63, %v1585_v2  ;;  %v1608_v59 = vrot.slane %v2036_v21, %v1949_v45 }
  0xed   :  { %v130_v31 = vpop.xlane.xlu0 %129  ;;  %v1157_v5 = vsel %vm993_vm4, %v1099_v27, %v1080_v3  ;;  %v1126_v24 = vrot.slane %v1035_v29, %v1949_v45  ;;  %v217_v25 = vmul.f32 0.03125, %v133_v7 }
  0xee   :  { %v1122_v33 = vrot.slane %v1034_v30, %v1946_v44  ;;  %v216_v52 = vmul.f32 0.03125, %v130_v31 }
  0xf0   :  { %v1127_v14 = vsel %vm711_vm1, %v1126_v24, %v1122_v33  ;;  %v184_v34 = vpop.xlane.xlu1 %183  ;;  %v1604_v24 = vrot.slane %v2038_v22, %v1946_v44 }
  0xf1   :  { %v175_v35 = vpop.xlane.xlu0 %174  ;;  %v234_v38 = vmul.f32 0.03125, %v184_v34 }
  0xf2   :  { %v231_v39 = vmul.f32 0.03125, %v175_v35 }
  0xf3   :  { %v554_v40 = vadd.f32 %v234_v38, %v214_v36 }
  0xf4   :  { %v551_v42 = vadd.f32 %v231_v39, %v211_v37  ;;  %v193_v43 = vpop.xlane.xlu1 %192 }
  0xf5   :  { %v190_v46 = vpop.xlane.xlu0 %189  ;;  %v2059_v47 = vmul.f32 0.5, %v554_v40  ;;  %v237_v49 = vmul.f32 0.03125, %v193_v43 }
  0xf6   :  { %v2061_v48 = vmul.f32 0.5, %v551_v42  ;;  %v236_v50 = vmul.f32 0.03125, %v190_v46 }
  0xf7   :  { %v1036_v53 = vmul.f32 %v2059_v47, %v2059_v47  ;;  %v557_v55 = vadd.f32 %v237_v49, %v217_v25  ;;  %v1613_v33 = vrot.slane %v2059_v47, %v1977_v41 }
  0xf8   :  { %v1033_v54 = vmul.f32 %v2061_v48, %v2061_v48  ;;  %v556_v56 = vadd.f32 %v236_v50, %v216_v52  ;;  %v136_v57 = vpop.xlane.xlu1 %135  ;;  %v1599_v40 = vrot.slane %v2061_v48, %v2020_v51 }
  0xf9   :  { %v127_v58 = vpop.xlane.xlu0 %126  ;;  %v1131_v60 = vrot.slane %v1036_v53, %v1977_v41  ;;  %v2069_v32 = vmul.f32 0.5, %v557_v55  ;;  %v218_v6 = vmul.f32 0.03125, %v136_v57 }
  0xfa   :  { %v1117_v61 = vrot.slane %v1033_v54, %v2020_v51  ;;  %v2071_v62 = vmul.f32 0.5, %v556_v56  ;;  %v215_v16 = vmul.f32 0.03125, %v127_v58 }
  0xfb   :  { %v1132_v1 = vsel %vm718_vm2, %v1131_v60, %v1127_v14  ;;  %v1039_v3 = vmul.f32 %v2069_v32, %v2069_v32  ;;  %v1627_v48 = vrot.slane %v2069_v32, %v1949_v45 }
  0xfc   :  { %v1118_v0 = vsel %vm725_vm3, %v1117_v61, %v1113_v26  ;;  %v1038_v4 = vmul.f32 %v2071_v62, %v2071_v62  ;;  %v196_v9 = vpop.xlane.xlu1 %195 }
  0xfd   :  { %v187_v12 = vpop.xlane.xlu0 %186  ;;  %v238_v8 = vmul.f32 0.03125, %v196_v9  ;;  %v1158_v17 = vsel %vm995_vm5, %v1118_v0, %v1157_v5  ;;  %v1145_v19 = vrot.slane %v1039_v3, %v1949_v45  ;;  %v1595_v5 = vsel %vm718_vm2, %v1594_v18, %v1590_v23 }
  0xfe   :  { %v235_v10 = vmul.f32 0.03125, %v187_v12  ;;  %v1141_v11 = vrot.slane %v1038_v4, %v1946_v44  ;;  %v1623_v3 = vrot.slane %v2071_v62, %v1946_v44  ;;  %v1600_v12 = vsel %vm725_vm3, %v1599_v40, %v1595_v5 }
  0xff   :  { %v558_v20 = vadd.f32 %v238_v8, %v218_v6  ;;  %v1640_v23 = vsel %vm995_vm5, %v1600_v12, %v2049_v28 }
 0x100   :  { %v555_v15 = vadd.f32 %v235_v10, %v215_v16  ;;  %v305_v13 = vpop.xlane.xlu1 %304  ;;  %v1146_v27 = vsel %vm711_vm1, %v1145_v19, %v1141_v11 }
 0x101   :  { %v302_v26 = vpop.xlane.xlu0 %301  ;;  %v2090_v29 = vmul.f32 0.5, %v558_v20  ;;  %v481_v7 = vmul.f32 0.03125, %v305_v13 }
 0x102   :  { %v575_v30 = vmul.f32 0.5, %v555_v15  ;;  %v480_v31 = vmul.f32 0.03125, %v302_v26 }
 0x103   :  { %v1040_v14 = vmul.f32 %v2090_v29, %v2090_v29  ;;  %v581_v35 = vmul.f32 %v481_v7, %v481_v7  ;;  %v1233_v36 = vrot.slane %v481_v7, %v1949_v45  ;;  %v1632_v16 = vrot.slane %v2090_v29, %v1977_v41 }
 0x104   :  { %v1037_v34 = vmul.f32 %v575_v30, %v575_v30  ;;  %v580_v37 = vmul.f32 %v480_v31, %v480_v31  ;;  %v1229_v38 = vrot.slane %v480_v31, %v1946_v44  ;;  %v317_v21 = vpop.xlane.xlu1 %316  ;;  %v1618_v55 = vrot.slane %v575_v30, %v2020_v51 }
 0x105   :  { %v314_v39 = vpop.xlane.xlu0 %313  ;;  %v485_v42 = vmul.f32 0.03125, %v317_v21  ;;  %v1150_v46 = vrot.slane %v1040_v14, %v1977_v41  ;;  %v710_v47 = vrot.slane %v581_v35, %v1949_v45 }
 0x106   :  { %v1136_v22 = vrot.slane %v1037_v34, %v2020_v51  ;;  %v484_v43 = vmul.f32 0.03125, %v314_v39  ;;  %v705_v49 = vrot.slane %v580_v37, %v1946_v44  ;;  %v1234_v50 = vsel %vm711_vm1, %v1233_v36, %v1229_v38 }
 0x107   :  { %v585_v25 = vmul.f32 %v485_v42, %v485_v42  ;;  %v1252_v52 = vrot.slane %v485_v42, %v1949_v45  ;;  %v1151_v32 = vsel %vm718_vm2, %v1150_v46, %v1146_v27 }
 0x108   :  { %v584_v53 = vmul.f32 %v484_v43, %v484_v43  ;;  %v1248_v54 = vrot.slane %v484_v43, %v1946_v44  ;;  %v712_v56 = vsel %vm711_vm1, %v710_v47, %v705_v49  ;;  %v199_v57 = vpop.xlane.xlu1 %198  ;;  %v1137_v60 = vsel %vm725_vm3, %v1136_v22, %v1132_v1 }
 0x109   :  { %v139_v58 = vpop.xlane.xlu0 %138  ;;  %v734_v61 = vrot.slane %v585_v25, %v1949_v45  ;;  %v239_v2 = vmul.f32 0.03125, %v199_v57  ;;  %v1159_v6 = vsel %vm997_vm6, %v1137_v60, %v1158_v17  ;;  %v1609_v1 = vsel %vm711_vm1, %v1608_v59, %v1604_v24 }
 0x10a   :  { %v730_v63 = vrot.slane %v584_v53, %v1946_v44  ;;  %v1253_v0 = vsel %vm711_vm1, %v1252_v52, %v1248_v54  ;;  %v219_v4 = vmul.f32 0.03125, %v139_v58  ;;  %v1614_v19 = vsel %vm718_vm2, %v1613_v33, %v1609_v1 }
 0x10b   :  { %v1619_v20 = vsel %vm725_vm3, %v1618_v55, %v1614_v19  ;;  %v1628_v17 = vsel %vm711_vm1, %v1627_v48, %v1623_v3 }
 0x10c   :  { %v735_v9 = vsel %vm711_vm1, %v734_v61, %v730_v63  ;;  %v559_v8 = vadd.f32 %v239_v2, %v219_v4  ;;  %v320_v10 = vpop.xlane.xlu1 %319  ;;  %v1633_v5 = vsel %vm718_vm2, %v1632_v16, %v1628_v17  ;;  %v1641_v24 = vsel %vm997_vm6, %v1619_v20, %v1640_v23 }
 0x10d   :  { %v308_v18 = vpop.xlane.xlu0 %307  ;;  %v486_v62 = vmul.f32 0.03125, %v320_v10 }
 0x10e   :  { %v482_v11 = vmul.f32 0.03125, %v308_v18  ;;  %v579_v15 = vmul.f32 0.5, %v559_v8 }
 0x10f   :  { %v586_v13 = vmul.f32 %v486_v62, %v486_v62  ;;  %v1257_v26 = vrot.slane %v486_v62, %v1977_v41 }
 0x110   :  { %v582_v27 = vmul.f32 %v482_v11, %v482_v11  ;;  %v1238_v29 = vrot.slane %v482_v11, %v1977_v41  ;;  %v1041_v30 = vmul.f32 %v579_v15, %v579_v15  ;;  %v1637_v7 = vrot.slane %v579_v15, %v2020_v51  ;;  %v329_v31 = vpop.xlane.xlu1 %328 }
 0x111   :  { %v326_v59 = vpop.xlane.xlu0 %325  ;;  %v739_v33 = vrot.slane %v586_v13, %v1977_v41  ;;  %v1258_v14 = vsel %vm718_vm2, %v1257_v26, %v1253_v0  ;;  %v489_v36 = vmul.f32 0.03125, %v329_v31 }
 0x112   :  { %v717_v28 = vrot.slane %v582_v27, %v1977_v41  ;;  %v1239_v34 = vsel %vm718_vm2, %v1238_v29, %v1234_v50  ;;  %v1155_v35 = vrot.slane %v1041_v30, %v2020_v51  ;;  %v488_v37 = vmul.f32 0.03125, %v326_v59 }
 0x113   :  { %v1638_v38 = vsel %vm725_vm3, %v1637_v7, %v1633_v5  ;;  %v740_v21 = vsel %vm718_vm2, %v739_v33, %v735_v9  ;;  %v589_v22 = vmul.f32 %v489_v36, %v489_v36  ;;  %v1271_v42 = vrot.slane %v489_v36, %v1949_v45 }
 0x114   :  { %v719_v39 = vsel %vm718_vm2, %v717_v28, %v712_v56  ;;  %v1642_v40 = vsel %vm999_vm7, %v1638_v38, %v1641_v24  ;;  %v588_v43 = vmul.f32 %v488_v37, %v488_v37  ;;  %v1267_v46 = vrot.slane %v488_v37, %v1946_v44  ;;  %v323_v47 = vpop.xlane.xlu1 %322 }
 0x115   :  { %1761 = vmatprep.subr.msk.mxu0 %vm79_vm0, %v1642_v40  ;;  %v311_v49 = vpop.xlane.xlu0 %310  ;;  %v487_v50 = vmul.f32 0.03125, %v323_v47  ;;  %v1156_v52 = vsel %vm725_vm3, %v1155_v35, %v1151_v32  ;;  %v753_v53 = vrot.slane %v589_v22, %v1949_v45 }
 0x116   :  { %1762 = vmatpush3.xpose.msk.msra.mxu0 %vm79_vm0, %v1642_v40  ;;  %v483_v25 = vmul.f32 0.03125, %v311_v49  ;;  %v749_v54 = vrot.slane %v588_v43, %v1946_v44  ;;  %v1272_v48 = vsel %vm711_vm1, %v1271_v42, %v1267_v46  ;;  %v2157_v55 = vsel %vm999_vm7, %v1156_v52, %v1159_v6 }
 0x117   :  { %v587_v56 = vmul.f32 %v487_v50, %v487_v50  ;;  %v1262_v57 = vrot.slane %v487_v50, %v2020_v51 }
 0x118   :  { %v583_v58 = vmul.f32 %v483_v25, %v483_v25  ;;  %v1243_v60 = vrot.slane %v483_v25, %v2020_v51  ;;  %v754_v61 = vsel %vm711_vm1, %v753_v53, %v749_v54  ;;  %v338_v63 = vpop.xlane.xlu1 %337 }
 0x119   :  { %v332_v0 = vpop.xlane.xlu0 %331  ;;  %v744_v2 = vrot.slane %v587_v56, %v2020_v51  ;;  %v1263_v3 = vsel %vm725_vm3, %v1262_v57, %v1258_v14  ;;  %v492_v9 = vmul.f32 0.03125, %v338_v63 }
 0x11a   :  { %v724_v4 = vrot.slane %v583_v58, %v2020_v51  ;;  %v1244_v32 = vsel %vm725_vm3, %v1243_v60, %v1239_v34  ;;  %v490_v12 = vmul.f32 0.03125, %v332_v0 }
 0x11b   :  { %v1511_v6 = vsel %vm993_vm4, %v1263_v3, %v1244_v32  ;;  %v745_v1 = vsel %vm725_vm3, %v744_v2, %v740_v21  ;;  %v592_v10 = vmul.f32 %v492_v9, %v492_v9  ;;  %v1286_v27 = vrot.slane %v492_v9, %v1946_v44 }
 0x11c   :  { %v726_v16 = vsel %vm725_vm3, %v724_v4, %v719_v39  ;;  %v590_v18 = vmul.f32 %v490_v12, %v490_v12  ;;  %v398_v19 = vpop.xlane.xlu1 %397  ;;  %v1276_v11 = vrot.slane %v490_v12, %v1977_v41 }
 0x11d   :  { %v994_v8 = vsel %vm993_vm4, %v745_v1, %v726_v16  ;;  %v341_v62 = vpop.xlane.xlu0 %340  ;;  %v512_v20 = vmul.f32 0.03125, %v398_v19  ;;  %v768_v26 = vrot.slane %v592_v10, %v1946_v44 }
 0x11e   :  { %v493_v15 = vmul.f32 0.03125, %v341_v62  ;;  %v758_v17 = vrot.slane %v590_v18, %v1977_v41  ;;  %v1277_v23 = vsel %vm718_vm2, %v1276_v11, %v1272_v48 }
 0x11f   :  { %v612_v59 = vmul.f32 %v512_v20, %v512_v20  ;;  %v1381_v35 = vrot.slane %v512_v20, %v1946_v44 }
 0x120   :  { %v593_v13 = vmul.f32 %v493_v15, %v493_v15  ;;  %v759_v29 = vsel %vm718_vm2, %v758_v17, %v754_v61  ;;  %v1290_v30 = vrot.slane %v493_v15, %v1949_v45  ;;  %v410_v7 = vpop.xlane.xlu1 %409 }
 0x121   :  { %v401_v31 = vpop.xlane.xlu0 %400  ;;  %v516_v24 = vmul.f32 0.03125, %v410_v7  ;;  %v863_v39 = vrot.slane %v612_v59, %v1946_v44 }
 0x122   :  { %v772_v5 = vrot.slane %v593_v13, %v1949_v45  ;;  %v513_v33 = vmul.f32 0.03125, %v401_v31  ;;  %v1291_v14 = vsel %vm711_vm1, %v1290_v30, %v1286_v27 }
 0x123   :  { %v616_v36 = vmul.f32 %v516_v24, %v516_v24  ;;  %v1400_v52 = vrot.slane %v516_v24, %v1946_v44 }
 0x124   :  { %v773_v28 = vsel %vm711_vm1, %v772_v5, %v768_v26  ;;  %v613_v34 = vmul.f32 %v513_v33, %v513_v33  ;;  %v1385_v37 = vrot.slane %v513_v33, %v1949_v45  ;;  %v335_v38 = vpop.xlane.xlu1 %334 }
 0x125   :  { %v413_v21 = vpop.xlane.xlu0 %412  ;;  %v491_v22 = vmul.f32 0.03125, %v335_v38  ;;  %v882_v25 = vrot.slane %v616_v36, %v1946_v44 }
 0x126   :  { %v867_v40 = vrot.slane %v613_v34, %v1949_v45  ;;  %v517_v42 = vmul.f32 0.03125, %v413_v21  ;;  %v1386_v43 = vsel %vm711_vm1, %v1385_v37, %v1381_v35 }
 0x127   :  { %v591_v47 = vmul.f32 %v491_v22, %v491_v22  ;;  %v1281_v49 = vrot.slane %v491_v22, %v2020_v51 }
 0x128   :  { %v868_v46 = vsel %vm711_vm1, %v867_v40, %v863_v39  ;;  %v617_v50 = vmul.f32 %v517_v42, %v517_v42  ;;  %v1404_v53 = vrot.slane %v517_v42, %v1949_v45  ;;  %v350_v54 = vpop.xlane.xlu1 %349 }
 0x129   :  { %v344_v48 = vpop.xlane.xlu0 %343  ;;  %v763_v56 = vrot.slane %v591_v47, %v2020_v51  ;;  %v1282_v57 = vsel %vm725_vm3, %v1281_v49, %v1277_v23  ;;  %v496_v60 = vmul.f32 0.03125, %v350_v54 }
 0x12a   :  { %v886_v58 = vrot.slane %v617_v50, %v1949_v45  ;;  %v1512_v61 = vsel %vm995_vm5, %v1282_v57, %v1511_v6  ;;  %v1405_v63 = vsel %vm711_vm1, %v1404_v53, %v1400_v52  ;;  %v494_v0 = vmul.f32 0.03125, %v344_v48 }
 0x12b   :  { %v764_v2 = vsel %vm725_vm3, %v763_v56, %v759_v29  ;;  %v596_v32 = vmul.f32 %v496_v60, %v496_v60  ;;  %v1305_v19 = vrot.slane %v496_v60, %v1946_v44 }
 0x12c   :  { %v887_v3 = vsel %vm711_vm1, %v886_v58, %v882_v25  ;;  %v996_v4 = vsel %vm995_vm5, %v764_v2, %v994_v8  ;;  %v594_v9 = vmul.f32 %v494_v0, %v494_v0  ;;  %v1295_v12 = vrot.slane %v494_v0, %v1977_v41  ;;  %v404_v1 = vpop.xlane.xlu1 %403 }
 0x12d   :  { %v353_v16 = vpop.xlane.xlu0 %352  ;;  %v514_v10 = vmul.f32 0.03125, %v404_v1  ;;  %v787_v17 = vrot.slane %v596_v32, %v1946_v44 }
 0x12e   :  { %v497_v18 = vmul.f32 0.03125, %v353_v16  ;;  %v777_v6 = vrot.slane %v594_v9, %v1977_v41  ;;  %v1296_v62 = vsel %vm718_vm2, %v1295_v12, %v1291_v14 }
 0x12f   :  { %v614_v11 = vmul.f32 %v514_v10, %v514_v10  ;;  %v1390_v20 = vrot.slane %v514_v10, %v1977_v41 }
 0x130   :  { %v597_v15 = vmul.f32 %v497_v18, %v497_v18  ;;  %v1309_v8 = vrot.slane %v497_v18, %v1949_v45  ;;  %v778_v23 = vsel %vm718_vm2, %v777_v6, %v773_v28  ;;  %v422_v13 = vpop.xlane.xlu1 %421 }
 0x131   :  { %v416_v26 = vpop.xlane.xlu0 %415  ;;  %v872_v27 = vrot.slane %v614_v11, %v1977_v41  ;;  %v1391_v29 = vsel %vm718_vm2, %v1390_v20, %v1386_v43  ;;  %v520_v20 = vmul.f32 0.03125, %v422_v13 }
 0x132   :  { %v791_v30 = vrot.slane %v597_v15, %v1949_v45  ;;  %v1310_v7 = vsel %vm711_vm1, %v1309_v8, %v1305_v19  ;;  %v518_v31 = vmul.f32 0.03125, %v416_v26 }
 0x133   :  { %v873_v59 = vsel %vm718_vm2, %v872_v27, %v868_v46 }
 0x134   :  { %v792_v5 = vsel %vm711_vm1, %v791_v30, %v787_v17  ;;  %v618_v24 = vmul.f32 %v518_v31, %v518_v31  ;;  %v1409_v33 = vrot.slane %v518_v31, %v1977_v41  ;;  %v347_v14 = vpop.xlane.xlu1 %346 }
 0x135   :  { %v425_v28 = vpop.xlane.xlu0 %424  ;;  %v495_v34 = vmul.f32 0.03125, %v347_v14 }
 0x136   :  { %v891_v35 = vrot.slane %v618_v24, %v1977_v41  ;;  %v1410_v36 = vsel %vm718_vm2, %v1409_v33, %v1405_v63  ;;  %v521_v19 = vmul.f32 0.03125, %v425_v28  ;;  %v620_v33 = vmul.f32 %v520_v20, %v520_v20 }
 0x137   :  { %v595_v37 = vmul.f32 %v495_v34, %v495_v34  ;;  %v1300_v38 = vrot.slane %v495_v34, %v2020_v51 }
 0x138   :  { %v892_v21 = vsel %vm718_vm2, %v891_v35, %v887_v3  ;;  %v362_v39 = vpop.xlane.xlu1 %361  ;;  %v1423_v28 = vrot.slane %v521_v19, %v1949_v45 }
 0x139   :  { %v356_v40 = vpop.xlane.xlu0 %355  ;;  %v782_v22 = vrot.slane %v595_v37, %v2020_v51  ;;  %v1301_v42 = vsel %vm725_vm3, %v1300_v38, %v1296_v62 }
 0x13a   :  { %v1513_v43 = vsel %vm997_vm6, %v1301_v42, %v1512_v61  ;;  %v498_v48 = vmul.f32 0.03125, %v356_v40  ;;  %v901_v40 = vrot.slane %v620_v33, %v1946_v44 }
 0x13b   :  { %v783_v46 = vsel %vm725_vm3, %v782_v22, %v778_v23  ;;  %v500_v22 = vmul.f32 0.03125, %v362_v39 }
 0x13c   :  { %v998_v47 = vsel %vm997_vm6, %v783_v46, %v996_v4  ;;  %v407_v49 = vpop.xlane.xlu1 %406  ;;  %v598_v2 = vmul.f32 %v498_v48, %v498_v48  ;;  %v1314_v12 = vrot.slane %v498_v48, %v1977_v41 }
 0x13d   :  { %v365_v50 = vpop.xlane.xlu0 %364  ;;  %v515_v25 = vmul.f32 0.03125, %v407_v49 }
 0x13e   :  { %v796_v11 = vrot.slane %v598_v2, %v1977_v41  ;;  %v1315_v23 = vsel %vm718_vm2, %v1314_v12, %v1310_v7  ;;  %v501_v38 = vmul.f32 0.03125, %v365_v50 }
 0x13f   :  { %v615_v52 = vmul.f32 %v515_v25, %v515_v25  ;;  %v1395_v56 = vrot.slane %v515_v25, %v2020_v51 }
 0x140   :  { %v428_v53 = vpop.xlane.xlu1 %427  ;;  %v601_v50 = vmul.f32 %v501_v38, %v501_v38 }
 0x141   :  { %v419_v54 = vpop.xlane.xlu0 %418  ;;  %v877_v58 = vrot.slane %v615_v52, %v2020_v51  ;;  %v1396_v3 = vsel %vm725_vm3, %v1395_v56, %v1391_v29  ;;  %v522_v15 = vmul.f32 0.03125, %v428_v53  ;;  %v621_v29 = vmul.f32 %v521_v19, %v521_v19 }
 0x142   :  { %v519_v57 = vmul.f32 0.03125, %v419_v54 }
 0x143   :  { %v878_v1 = vsel %vm725_vm3, %v877_v58, %v873_v59  ;;  %v797_v59 = vsel %vm718_vm2, %v796_v11, %v792_v5  ;;  %v622_v13 = vmul.f32 %v522_v15, %v522_v15  ;;  %v905_v7 = vrot.slane %v621_v29, %v1949_v45 }
 0x144   :  { %v619_v60 = vmul.f32 %v519_v57, %v519_v57  ;;  %v1414_v63 = vrot.slane %v519_v57, %v2020_v51  ;;  %v437_v61 = vpop.xlane.xlu1 %436  ;;  %v1428_v35 = vrot.slane %v522_v15, %v1977_v41  ;;  %v1419_v5 = vrot.slane %v520_v20, %v1946_v44 }
 0x145   :  { %v434_v0 = vpop.xlane.xlu0 %433  ;;  %v910_v42 = vrot.slane %v622_v13, %v1977_v41  ;;  %v525_v46 = vmul.f32 0.03125, %v437_v61  ;;  %v906_v53 = vsel %vm711_vm1, %v905_v7, %v901_v40  ;;  %v600_v58 = vmul.f32 %v500_v22, %v500_v22 }
 0x146   :  { %v896_v4 = vrot.slane %v619_v60, %v2020_v51  ;;  %v1415_v32 = vsel %vm725_vm3, %v1414_v63, %v1410_v36  ;;  %v524_v54 = vmul.f32 0.03125, %v434_v0 }
 0x147   :  { %v1518_v9 = vsel %vm993_vm4, %v1415_v32, %v1396_v3  ;;  %v911_v60 = vsel %vm718_vm2, %v910_v42, %v906_v53  ;;  %v625_v61 = vmul.f32 %v525_v46, %v525_v46  ;;  %v1442_v11 = vrot.slane %v525_v46, %v1949_v45 }
 0x148   :  { %v897_v16 = vsel %vm725_vm3, %v896_v4, %v892_v21  ;;  %v368_v10 = vpop.xlane.xlu1 %367  ;;  %v624_v0 = vmul.f32 %v524_v54, %v524_v54  ;;  %v1438_v20 = vrot.slane %v524_v54, %v1946_v44 }
 0x149   :  { %v359_v18 = vpop.xlane.xlu0 %358  ;;  %v1007_v6 = vsel %vm993_vm4, %v897_v16, %v878_v1  ;;  %v502_v56 = vmul.f32 0.03125, %v368_v10  ;;  %v810_v16 = vrot.slane %v601_v50, %v1949_v45  ;;  %v1328_v10 = vrot.slane %v501_v38, %v1949_v45 }
 0x14a   :  { %v499_v62 = vmul.f32 0.03125, %v359_v18  ;;  %v924_v15 = vrot.slane %v625_v61, %v1949_v45 }
 0x14b   :  { %v602_v18 = vmul.f32 %v502_v56, %v502_v56 }
 0x14c   :  { %v599_v8 = vmul.f32 %v499_v62, %v499_v62  ;;  %v1319_v17 = vrot.slane %v499_v62, %v2020_v51  ;;  %v377_v26 = vpop.xlane.xlu1 %376  ;;  %v1324_v62 = vrot.slane %v500_v22, %v1946_v44 }
 0x14d   :  { %v374_v27 = vpop.xlane.xlu0 %373  ;;  %v505_v2 = vmul.f32 0.03125, %v377_v26  ;;  %v920_v26 = vrot.slane %v624_v0, %v1946_v44  ;;  %v815_v13 = vrot.slane %v602_v18, %v1977_v41 }
 0x14e   :  { %v801_v30 = vrot.slane %v599_v8, %v2020_v51  ;;  %v1320_v31 = vsel %vm725_vm3, %v1319_v17, %v1315_v23  ;;  %v504_v3 = vmul.f32 0.03125, %v374_v27  ;;  %v1333_v27 = vrot.slane %v502_v56, %v1977_v41 }
 0x14f   :  { %v2240_v24 = vsel %vm999_vm7, %v1320_v31, %v1513_v43  ;;  %v1424_v43 = vsel %vm711_vm1, %v1423_v28, %v1419_v5  ;;  %v605_v8 = vmul.f32 %v505_v2, %v505_v2  ;;  %v1329_v33 = vsel %vm711_vm1, %v1328_v10, %v1324_v62 }
 0x150   :  { %v802_v14 = vsel %vm725_vm3, %v801_v30, %v797_v59  ;;  %v440_v34 = vpop.xlane.xlu1 %439  ;;  %v1443_v28 = vsel %vm711_vm1, %v1442_v11, %v1438_v20  ;;  %v1343_v7 = vrot.slane %v504_v3, %v1946_v44  ;;  %v925_v22 = vsel %vm711_vm1, %v924_v15, %v920_v26 }
 0x151   :  { %v431_v36 = vpop.xlane.xlu0 %430  ;;  %v2247_v37 = vsel %vm999_vm7, %v802_v14, %v998_v47  ;;  %v1429_v47 = vsel %vm718_vm2, %v1428_v35, %v1424_v43  ;;  %v526_v19 = vmul.f32 0.03125, %v440_v34  ;;  %v1347_v34 = vrot.slane %v505_v2, %v1949_v45 }
 0x152   :  { %v523_v21 = vmul.f32 0.03125, %v431_v36  ;;  %v829_v36 = vrot.slane %v605_v8, %v1949_v45  ;;  %v1334_v42 = vsel %vm718_vm2, %v1333_v27, %v1329_v33 }
 0x153   :  { %v626_v14 = vmul.f32 %v526_v19, %v526_v19  ;;  %v1447_v38 = vrot.slane %v526_v19, %v1977_v41 }
 0x154   :  { %v623_v49 = vmul.f32 %v523_v21, %v523_v21  ;;  %v1433_v25 = vrot.slane %v523_v21, %v2020_v51  ;;  %v449_v52 = vpop.xlane.xlu1 %448 }
 0x155   :  { %v446_v48 = vpop.xlane.xlu0 %445  ;;  %v529_v29 = vmul.f32 0.03125, %v449_v52  ;;  %v929_v52 = vrot.slane %v626_v14, %v1977_v41 }
 0x156   :  { %v915_v57 = vrot.slane %v623_v49, %v2020_v51  ;;  %v1434_v39 = vsel %vm725_vm3, %v1433_v25, %v1429_v47  ;;  %v528_v30 = vmul.f32 0.03125, %v446_v48 }
 0x157   :  { %v2260_v63 = vsel %vm995_vm5, %v1434_v39, %v1518_v9  ;;  %v806_v9 = vrot.slane %v600_v58, %v1946_v44  ;;  %v629_v43 = vmul.f32 %v529_v29, %v529_v29  ;;  %v1461_v54 = vrot.slane %v529_v29, %v1949_v45 }
 0x158   :  { %v916_v4 = vsel %vm725_vm3, %v915_v57, %v911_v60  ;;  %v380_v32 = vpop.xlane.xlu1 %379  ;;  %v628_v46 = vmul.f32 %v528_v30, %v528_v30  ;;  %v1457_v48 = vrot.slane %v528_v30, %v1946_v44  ;;  %v1348_v39 = vsel %vm711_vm1, %v1347_v34, %v1343_v7 }
 0x159   :  { %v2264_v12 = vsel %vm995_vm5, %v916_v4, %v1007_v6  ;;  %v371_v1 = vpop.xlane.xlu0 %370  ;;  %v604_v6 = vmul.f32 %v504_v3, %v504_v3  ;;  %v811_v59 = vsel %vm711_vm1, %v810_v16, %v806_v9  ;;  %v506_v35 = vmul.f32 0.03125, %v380_v32 }
 0x15a   :  { %v503_v17 = vmul.f32 0.03125, %v371_v1  ;;  %v816_v25 = vsel %vm718_vm2, %v815_v13, %v811_v59  ;;  %v1448_v58 = vsel %vm718_vm2, %v1447_v38, %v1443_v28  ;;  %v943_v2 = vrot.slane %v629_v43, %v1949_v45 }
 0x15b   :  { %v825_v5 = vrot.slane %v604_v6, %v1946_v44  ;;  %v606_v50 = vmul.f32 %v506_v35, %v506_v35  ;;  %v939_v3 = vrot.slane %v628_v46, %v1946_v44  ;;  %v1352_v4 = vrot.slane %v506_v35, %v1977_v41 }
 0x15c   :  { %v389_v23 = vpop.xlane.xlu1 %388  ;;  %v603_v21 = vmul.f32 %v503_v17, %v503_v17  ;;  %v1338_v56 = vrot.slane %v503_v17, %v2020_v51  ;;  %v2299_v1 = vsel %vm718_vm2, %v929_v52, %v925_v22  ;;  %v1462_v19 = vsel %vm711_vm1, %v1461_v54, %v1457_v48 }
 0x15d   :  { %v386_v31 = vpop.xlane.xlu0 %385  ;;  %v509_v53 = vmul.f32 0.03125, %v389_v23  ;;  %v830_v57 = vsel %vm711_vm1, %v829_v36, %v825_v5  ;;  %v834_v9 = vrot.slane %v606_v50, %v1977_v41  ;;  %v944_v23 = vsel %vm711_vm1, %v943_v2, %v939_v3 }
 0x15e   :  { %v508_v47 = vmul.f32 0.03125, %v386_v31  ;;  %v820_v60 = vrot.slane %v603_v21, %v2020_v51  ;;  %v1339_v62 = vsel %vm725_vm3, %v1338_v56, %v1334_v42  ;;  %v1353_v26 = vsel %vm718_vm2, %v1352_v4, %v1348_v39 }
 0x15f   :  { %v609_v16 = vmul.f32 %v509_v53, %v509_v53  ;;  %v1366_v11 = vrot.slane %v509_v53, %v1949_v45  ;;  %v835_v14 = vsel %vm718_vm2, %v834_v9, %v830_v57  ;;  %v1515_v34 = vsel %vm1001_vm8, %v1339_v62, %v2240_v24 }
 0x160   :  { %v452_v40 = vpop.xlane.xlu1 %451  ;;  %v608_v10 = vmul.f32 %v508_v47, %v508_v47  ;;  %v821_v20 = vsel %vm725_vm3, %v820_v60, %v816_v25  ;;  %v1362_v15 = vrot.slane %v508_v47, %v1946_v44 }
 0x161   :  { %v443_v49 = vpop.xlane.xlu0 %442  ;;  %v530_v32 = vmul.f32 0.03125, %v452_v40  ;;  %v848_v31 = vrot.slane %v609_v16, %v1949_v45  ;;  %v1002_v7 = vsel %vm1001_vm8, %v821_v20, %v2247_v37 }
 0x162   :  { %v527_v18 = vmul.f32 0.03125, %v443_v49  ;;  %v844_v59 = vrot.slane %v608_v10, %v1946_v44  ;;  %v1367_v35 = vsel %vm711_vm1, %v1366_v11, %v1362_v15 }
 0x163   :  { %v630_v27 = vmul.f32 %v530_v32, %v530_v32  ;;  %v1466_v22 = vrot.slane %v530_v32, %v1977_v41 }
 0x164   :  { %v461_v61 = vpop.xlane.xlu1 %460  ;;  %v627_v33 = vmul.f32 %v527_v18, %v527_v18  ;;  %v1452_v28 = vrot.slane %v527_v18, %v2020_v51  ;;  %v849_v49 = vsel %vm711_vm1, %v848_v31, %v844_v59 }
 0x165   :  { %v458_v0 = vpop.xlane.xlu0 %457  ;;  %v533_v8 = vmul.f32 0.03125, %v461_v61  ;;  %v948_v40 = vrot.slane %v630_v27, %v1977_v41  ;;  %v1467_v61 = vsel %vm718_vm2, %v1466_v22, %v1462_v19 }
 0x166   :  { %v532_v6 = vmul.f32 0.03125, %v458_v0  ;;  %v934_v24 = vrot.slane %v627_v33, %v2020_v51  ;;  %v1453_v52 = vsel %vm725_vm3, %v1452_v28, %v1448_v58 }
 0x167   :  { %v633_v36 = vmul.f32 %v533_v8, %v533_v8  ;;  %v1480_v53 = vrot.slane %v533_v8, %v1949_v45  ;;  %v949_v60 = vsel %vm718_vm2, %v948_v40, %v944_v23  ;;  %v1520_v4 = vsel %vm997_vm6, %v1453_v52, %v2260_v63 }
 0x168   :  { %v392_v17 = vpop.xlane.xlu1 %391  ;;  %v632_v5 = vmul.f32 %v532_v6, %v532_v6  ;;  %v1476_v56 = vrot.slane %v532_v6, %v1946_v44  ;;  %v935_v19 = vsel %vm725_vm3, %v934_v24, %v2299_v1 }
 0x169   :  { %v510_v29 = vmul.f32 0.03125, %v392_v17  ;;  %v383_v30 = vpop.xlane.xlu0 %382  ;;  %v962_v48 = vrot.slane %v633_v36, %v1949_v45 }
 0x16a   :  { %v507_v13 = vmul.f32 0.03125, %v383_v30  ;;  %v958_v50 = vrot.slane %v632_v5, %v1946_v44  ;;  %v1481_v20 = vsel %vm711_vm1, %v1480_v53, %v1476_v56 }
 0x16b   :  { %v610_v42 = vmul.f32 %v510_v29, %v510_v29  ;;  %v1371_v57 = vrot.slane %v510_v29, %v1977_v41 }
 0x16c   :  { %v607_v38 = vmul.f32 %v507_v13, %v507_v13  ;;  %v464_v21 = vpop.xlane.xlu1 %463  ;;  %v1357_v25 = vrot.slane %v507_v13, %v2020_v51  ;;  %v963_v11 = vsel %vm711_vm1, %v962_v48, %v958_v50 }
 0x16d   :  { %v534_v43 = vmul.f32 0.03125, %v464_v21  ;;  %v455_v46 = vpop.xlane.xlu0 %454  ;;  %v853_v58 = vrot.slane %v610_v42, %v1977_v41  ;;  %v1372_v15 = vsel %vm718_vm2, %v1371_v57, %v1367_v35 }
 0x16e   :  { %v531_v37 = vmul.f32 0.03125, %v455_v46  ;;  %v839_v47 = vrot.slane %v607_v38, %v2020_v51  ;;  %v1358_v16 = vsel %vm725_vm3, %v1357_v25, %v1353_v26 }
 0x16f   :  { %v634_v54 = vmul.f32 %v534_v43, %v534_v43  ;;  %v1485_v32 = vrot.slane %v534_v43, %v1977_v41  ;;  %v1516_v23 = vsel %vm1003_vm9, %v1358_v16, %v1515_v34  ;;  %v854_v26 = vsel %vm718_vm2, %v853_v58, %v849_v49 }
 0x170   :  { %v473_v39 = vpop.xlane.xlu1 %472  ;;  %v1471_v0 = vrot.slane %v531_v37, %v2020_v51  ;;  %v631_v18 = vmul.f32 %v531_v37, %v531_v37  ;;  %v840_v62 = vsel %vm725_vm3, %v839_v47, %v835_v14 }
 0x171   :  { %v537_v2 = vmul.f32 0.03125, %v473_v39  ;;  %v470_v3 = vpop.xlane.xlu0 %469  ;;  %v967_v10 = vrot.slane %v634_v54, %v1977_v41  ;;  %v1486_v27 = vsel %vm718_vm2, %v1485_v32, %v1481_v20  ;;  %v1004_v1 = vsel %vm1003_vm9, %v840_v62, %v1002_v7 }
 0x172   :  { %v536_v9 = vmul.f32 0.03125, %v470_v3  ;;  %v1472_v29 = vsel %vm725_vm3, %v1471_v0, %v1467_v61  ;;  %v953_v59 = vrot.slane %v631_v18, %v2020_v51 }
 0x173   :  { %v637_v8 = vmul.f32 %v537_v2, %v537_v2  ;;  %v968_v31 = vsel %vm718_vm2, %v967_v10, %v963_v11  ;;  %v1499_v14 = vrot.slane %v537_v2, %v1949_v45  ;;  %v1521_v40 = vsel %vm999_vm7, %v1472_v29, %v1520_v4 }
 0x174   :  { %v467_v63 = vpop.xlane.xlu1 %466  ;;  %v636_v33 = vmul.f32 %v536_v9, %v536_v9  ;;  %v1495_v38 = vrot.slane %v536_v9, %v1946_v44  ;;  %v954_v54 = vsel %vm725_vm3, %v953_v59, %v949_v60  ;;  %v1163_v10 = vsel %vm1162_vm11, %v2157_v55, 0.0 }
 0x175   :  { %v535_v6 = vmul.f32 0.03125, %v467_v63  ;;  %v395_v17 = vpop.xlane.xlu0 %394  ;;  %v981_v5 = vrot.slane %v637_v8, %v1949_v45 }
 0x176   :  { %v511_v30 = vmul.f32 0.03125, %v395_v17  ;;  %v977_v49 = vrot.slane %v636_v33, %v1946_v44  ;;  %v1500_v48 = vsel %vm711_vm1, %v1499_v14, %v1495_v38 }
 0x177   :  { %v635_v13 = vmul.f32 %v535_v6, %v535_v6  ;;  %v1490_v28 = vrot.slane %v535_v6, %v2020_v51 }
 0x178   :  { %v611_v34 = vmul.f32 %v511_v30, %v511_v30  ;;  %v1376_v35 = vrot.slane %v511_v30, %v2020_v51  ;;  %v479_v36 = vpop.xlane.xlu1 %478  ;;  %v982_v2 = vsel %vm711_vm1, %v981_v5, %v977_v49 }
 0x179   :  { %v476_v7 = vpop.xlane.xlu0 %475  ;;  %v539_v21 = vmul.f32 0.03125, %v479_v36  ;;  %v972_v22 = vrot.slane %v635_v13, %v2020_v51  ;;  %v1491_v37 = vsel %vm725_vm3, %v1490_v28, %v1486_v27 }
 0x17a   :  { %v858_v42 = vrot.slane %v611_v34, %v2020_v51  ;;  %v538_v43 = vmul.f32 0.03125, %v476_v7  ;;  %v1377_v46 = vsel %vm725_vm3, %v1376_v35, %v1372_v15  ;;  %v1522_v60 = vsel %vm1001_vm8, %v1491_v37, %v1521_v40 }
 0x17b   :  { %v639_v24 = vmul.f32 %v539_v21, %v539_v21  ;;  %v1509_v25 = vrot.slane %v539_v21, %v2020_v51  ;;  %v1517_v45 = vsel %vm1005_vm10, %v1377_v46, %v1516_v23  ;;  %v973_v58 = vsel %vm725_vm3, %v972_v22, %v968_v31 }
 0x17c   :  { %v638_v52 = vmul.f32 %v538_v43, %v538_v43  ;;  %v1504_v53 = vrot.slane %v538_v43, %v1977_v41  ;;  %1763 = vmatprep.mubr.msk.f32.mxu0 %vm79_vm0, %v1517_v45  ;;  %v859_v47 = vsel %vm725_vm3, %v858_v42, %v854_v26 }
 0x17d   :  { %v991_v50 = vrot.slane %v639_v24, %v2020_v51  ;;  %v1006_v56 = vsel %vm1005_vm10, %v859_v47, %v1004_v1  ;;  %v1009_v51 = vsel %vm997_vm6, %v935_v19, %v2264_v12 }
 0x17e   :  { %v986_v57 = vrot.slane %v638_v52, %v1977_v41  ;;  %v1505_v39 = vsel %vm718_vm2, %v1504_v53, %v1500_v48  ;;  %v1015_v61 = vsel %vm79_vm0, %v1006_v56, 0.0  ;;  %v1010_v32 = vsel %vm999_vm7, %v954_v54, %v1009_v51 }
 0x17f   :  { %1016 = vadd.xlane.f32.xlu0 %v1015_v61  ;;  %v1510_v3 = vsel %vm725_vm3, %v1509_v25, %v1505_v39  ;;  %v1011_v16 = vsel %vm1001_vm8, %v973_v58, %v1010_v32 }
 0x180   :  { %v1523_v4 = vsel %vm1003_vm9, %v1510_v3, %v1522_v60  ;;  %v987_v41 = vsel %vm718_vm2, %v986_v57, %v982_v2 }
 0x181   :  { %1764 = vmatmul.mubr.msk.f32.vlgmr.msra.gmra.mrb[0].mxu0 %vm79_vm0, %v1523_v4  ;;  %v992_v0 = vsel %vm725_vm3, %v991_v50, %v987_v41 }
 0x182   :  { %v1012_v18 = vsel %vm1003_vm9, %v992_v0, %v1011_v16 }
 0x183   :  { %1164 = vadd.xlane.f32.xlu0 %v1163_v10  ;;  %v1019_v12 = vsel %vm1018_vm12, %v1012_v18, 0.0 }
 0x184   :  { %1020 = vadd.xlane.f32.xlu1 %v1019_v12 }
 0x20c   :  { %v1017_v9 = vpop.xlane.xlu0 %1016 }
 0x210   :  { %v1165_v62 = vpop.xlane.xlu0 %1164 }
 0x211   :  { %v1021_v63 = vpop.xlane.xlu1 %1020  ;;  %v1732_v8 = vrot.slane %v1165_v62, %v1946_v44 }
 0x254   :  { %v1765_v19 = vpop.f32.mrb[0].mxu0 }
 0x255   :  { %v1725_v11 = vmul.f32 2.0, %v1765_v19  ;;  %v1715_v20 = vpop.f32.mrb[1].mxu0 }
 0x256   :  { %v1724_v15 = vmul.f32 2.0, %v1715_v20 }
 0x257   :  { %v1727_v6 = vsub.f32 %v1725_v11, %v1021_v63 }
 0x258   :  { %v1726_v17 = vsub.f32 %v1724_v15, %v1017_v9 }
 0x259   :  { %v1742_v23 = vsub.f32 %v1727_v6, %v1732_v8 }
 0x25a   :  { %v1741_v26 = vsub.f32 %v1726_v17, %v1732_v8 }
 0x25b   :  { %v1744_v55 = vmul.f32 0.5, %v1742_v23 }
 0x25c   :  { %v1743_v27 = vmul.f32 0.5, %v1741_v26 }
 0x25d   :  { %1748 = vst.msk [vmem:[%s2399_s2 + $0x8] sm:$0x7f] %vm1747_vm13, %v1744_v55 }
 0x25e   :  { %1746 = vst.msk [vmem:[%s2399_s2] sm:$0xff] %vm1745_vm14, %v1743_v27 }
 0x25f   :  { %1753 = vsyncpa [#allocation3], 1 }
 0x260   :  { %1754 = vsyncpa [#allocation5], 1 }

</bundles_post_ra>
